<compile_context>
chip_gen: v6e
topology: v6e:2x2x1
jax: 0.10.0
libtpu: 0.0.40
codegen_flags: <defaults>
</compile_context>

<pallas_src>
import numpy as np
import jax
import jax.numpy as jnp
from jax.experimental import pallas as pl
from jax.experimental.pallas import tpu as pltpu

NEG_SLOPE = 0.1
BN_EPS = 1e-5


# ---------------------------------------------------------------------------
# In-kernel helpers
# ---------------------------------------------------------------------------

def _conv_pool_rows_nhcw(in_ref, w_ref, b_ref, s_ref, t_ref, sel_ref, out_ref,
                         *, K, Hp, Wc):
    """conv(valid,k=K)+bias+LeakyReLU+BN, then MaxPool2d(3).  NHCW layout
    (C on sublanes, W on lanes).  in_ref (Hin, Cin, Win) bf16,
    w_ref (Cout, K*K*Cin) bf16, out_ref (Hp, Cout, Wp)."""

    def conv_row(y):
        pieces = []
        for r in range(K):                           # static unroll over taps
            row = in_ref[y + r]                      # (Cin, Win), dynamic lead idx
            for c in range(K):
                pieces.append(row[:, c:c + Wc])      # (Cin, Wc) shifted slice
        # fold all K*K taps into the contraction dim -> one wide MXU matmul
        patch = jnp.concatenate(pieces, axis=0)      # (K*K*Cin, Wc) bf16
        acc = jnp.dot(w_ref[...], patch.astype(jnp.bfloat16),
                      preferred_element_type=jnp.float32)   # (Cout, Wc) f32
        acc = acc + b_ref[...]                       # conv bias (Cout, 1)
        acc = jnp.where(acc > 0, acc, NEG_SLOPE * acc)       # LeakyReLU(0.1)
        return acc * s_ref[...] + t_ref[...]         # eval-mode BatchNorm

    def body(p, carry):
        hmax = conv_row(3 * p)                       # running max over the 3 H rows
        hmax = jnp.maximum(hmax, conv_row(3 * p + 1))
        hmax = jnp.maximum(hmax, conv_row(3 * p + 2))
        # 3-wide window max along W (shifted lane slices), then stride-3 compaction
        m = jnp.maximum(hmax[:, 0:Wc - 2],
                        jnp.maximum(hmax[:, 1:Wc - 1], hmax[:, 2:Wc]))
        pooled = jnp.dot(m.astype(jnp.bfloat16), sel_ref[...],
                         preferred_element_type=jnp.float32)  # (Cout, Wp)
        out_ref[p] = pooled.astype(out_ref.dtype)
        return carry

    jax.lax.fori_loop(0, Hp, body, 0)


def _conv_row_cl(in_ref, w_ref, b_ref, s_ref, t_ref, y, *, K, Wc, bn):
    """One conv output row in channels-last layout (Cout on lanes)."""
    pieces = []
    for r in range(K):
        row = in_ref[y + r]                          # (Win, Cin)
        for c in range(K):
            pieces.append(row[c:c + Wc, :])          # (Wc, Cin)
    patch = jnp.concatenate(pieces, axis=1)          # (Wc, K*K*Cin)
    acc = jnp.dot(patch.astype(jnp.bfloat16), w_ref[...],
                  preferred_element_type=jnp.float32)        # (Wc, Cout) f32
    acc = acc + b_ref[...]
    acc = jnp.where(acc > 0, acc, NEG_SLOPE * acc)
    if bn:
        acc = acc * s_ref[...] + t_ref[...]
    return acc


def _conv_pool_rows_cl(in_ref, w_ref, b_ref, s_ref, t_ref, sel_ref, out_ref,
                       *, K, Hp, Wc):
    """conv+bias+LeakyReLU+BN+MaxPool2d(3), channels-last layout."""

    def body(p, carry):
        h = _conv_row_cl(in_ref, w_ref, b_ref, s_ref, t_ref, 3 * p,
                         K=K, Wc=Wc, bn=True)
        h = jnp.maximum(h, _conv_row_cl(in_ref, w_ref, b_ref, s_ref, t_ref,
                                        3 * p + 1, K=K, Wc=Wc, bn=True))
        h = jnp.maximum(h, _conv_row_cl(in_ref, w_ref, b_ref, s_ref, t_ref,
                                        3 * p + 2, K=K, Wc=Wc, bn=True))
        # 3-wide window max along W (sublane shifts) + tiny stride-3 selection
        m = jnp.maximum(h[0:Wc - 2, :],
                        jnp.maximum(h[1:Wc - 1, :], h[2:Wc, :]))
        pooled = jnp.dot(sel_ref[...], m.astype(jnp.bfloat16),
                         preferred_element_type=jnp.float32)  # (Wp, Cout)
        out_ref[p] = pooled.astype(out_ref.dtype)
        return carry

    jax.lax.fori_loop(0, Hp, body, 0)


def make_shallow_kernel(K, Hp1, Wc1, Hp2, Wc2):
    """Layers 1+2 fused (one image per grid step), NHCW layout."""

    def kernel(x_ref, w1, b1, s1, t1, sel1, w2, b2, s2, t2, sel2, out_ref, h1_scr):
        _conv_pool_rows_nhcw(x_ref, w1, b1, s1, t1, sel1, h1_scr,
                             K=K, Hp=Hp1, Wc=Wc1)
        _conv_pool_rows_nhcw(h1_scr, w2, b2, s2, t2, sel2, out_ref,
                             K=K, Hp=Hp2, Wc=Wc2)

    return kernel


def make_deep_kernel(K3, Hp3, Wc3, K4, Hp4, Wc4, K5):
    """Layers 3+4+5 fused (one image per grid step), channels-last layout."""

    def kernel(x3_ref, w3, b3, s3, t3, sel3, w4, b4, s4, t4, sel4, w5, b5,
               out_ref, x4_scr, x5_scr):
        _conv_pool_rows_cl(x3_ref, w3, b3, s3, t3, sel3, x4_scr,
                           K=K3, Hp=Hp3, Wc=Wc3)
        _conv_pool_rows_cl(x4_scr, w4, b4, s4, t4, sel4, x5_scr,
                           K=K4, Hp=Hp4, Wc=Wc4)
        # final conv (k=K5): spatial collapses to 1x1 -> single im2col matmul
        pieces = []
        for r in range(K5):
            row = x5_scr[r]                           # (K5, C5)
            for c in range(K5):
                pieces.append(row[c:c + 1, :])        # (1, C5)
        patch = jnp.concatenate(pieces, axis=1)       # (1, K5*K5*C5)
        y = jnp.dot(patch.astype(jnp.bfloat16), w5[...],
                    preferred_element_type=jnp.float32)       # (1, C6)
        y = y + b5[...]
        y = jnp.where(y > 0, y, NEG_SLOPE * y)        # final LeakyReLU
        out_ref[...] = y.astype(out_ref.dtype)

    return kernel


# ---------------------------------------------------------------------------
# pallas_call wrappers
# ---------------------------------------------------------------------------

def _compiler_params():
    # 32 MiB scoped VMEM: valid on every TPU gen (v7x has 64 MiB physical),
    # comfortably above the ~17 MiB working set of the shallow kernel.
    return pltpu.CompilerParams(
        dimension_semantics=("parallel",),
        vmem_limit_bytes=32 * 1024 * 1024,
    )


def _full_spec(arr):
    shape = arr.shape
    return pl.BlockSpec(shape, lambda *args: (0,) * len(shape))


def shallow_call(x, l1, l2):
    """x: (N, H0, 16, W0) bf16 NHCW.  Returns (N, Hp2, C2, Wp2) bf16 NHCW."""
    N, H0, C0p, W0 = x.shape
    K = 3
    Hc1, Wc1 = H0 - K + 1, W0 - K + 1
    Hp1, Wp1 = Hc1 // 3, Wc1 // 3
    Hc2, Wc2 = Hp1 - K + 1, Wp1 - K + 1
    Hp2, Wp2 = Hc2 // 3, Wc2 // 3
    C1 = l1["w"].shape[0]
    C2 = l2["w"].shape[0]

    grid_spec = pltpu.PrefetchScalarGridSpec(
        num_scalar_prefetch=0,
        grid=(N,),
        in_specs=[
            pl.BlockSpec((None, H0, C0p, W0), lambda n: (n, 0, 0, 0)),
            _full_spec(l1["w"]), _full_spec(l1["b"]), _full_spec(l1["scale"]),
            _full_spec(l1["shift"]), _full_spec(l1["sel"]),
            _full_spec(l2["w"]), _full_spec(l2["b"]), _full_spec(l2["scale"]),
            _full_spec(l2["shift"]), _full_spec(l2["sel"]),
        ],
        out_specs=pl.BlockSpec((None, Hp2, C2, Wp2), lambda n: (n, 0, 0, 0)),
        scratch_shapes=[pltpu.VMEM((Hp1, C1, Wp1), jnp.bfloat16)],
    )
    return pl.pallas_call(
        make_shallow_kernel(K, Hp1, Wc1, Hp2, Wc2),
        out_shape=jax.ShapeDtypeStruct((N, Hp2, C2, Wp2), jnp.bfloat16),
        grid_spec=grid_spec,
        compiler_params=_compiler_params(),
    )(x, l1["w"], l1["b"], l1["scale"], l1["shift"], l1["sel"],
      l2["w"], l2["b"], l2["scale"], l2["shift"], l2["sel"])


def deep_call(x3, l3, l4, l5):
    """x3: (N, H3, W3, C3) bf16 channels-last.  Returns (N, 1, C6) f32."""
    N, H3, W3, C3 = x3.shape
    K3, K4, K5 = 5, 5, 4
    Hc3, Wc3 = H3 - K3 + 1, W3 - K3 + 1
    Hp3, Wp3 = Hc3 // 3, Wc3 // 3
    Hc4, Wc4 = Hp3 - K4 + 1, Wp3 - K4 + 1
    Hp4, Wp4 = Hc4 // 3, Wc4 // 3
    C4 = l3["w"].shape[1]
    C5 = l4["w"].shape[1]
    C6 = l5["w"].shape[1]

    grid_spec = pltpu.PrefetchScalarGridSpec(
        num_scalar_prefetch=0,
        grid=(N,),
        in_specs=[
            pl.BlockSpec((None, H3, W3, C3), lambda n: (n, 0, 0, 0)),
            _full_spec(l3["w"]), _full_spec(l3["b"]), _full_spec(l3["scale"]),
            _full_spec(l3["shift"]), _full_spec(l3["sel"]),
            _full_spec(l4["w"]), _full_spec(l4["b"]), _full_spec(l4["scale"]),
            _full_spec(l4["shift"]), _full_spec(l4["sel"]),
            _full_spec(l5["w"]), _full_spec(l5["b"]),
        ],
        out_specs=pl.BlockSpec((None, 1, C6), lambda n: (n, 0, 0)),
        scratch_shapes=[
            pltpu.VMEM((Hp3, Wp3, C4), jnp.bfloat16),
            pltpu.VMEM((Hp4, Wp4, C5), jnp.bfloat16),
        ],
    )
    return pl.pallas_call(
        make_deep_kernel(K3, Hp3, Wc3, K4, Hp4, Wc4, K5),
        out_shape=jax.ShapeDtypeStruct((N, 1, C6), jnp.float32),
        grid_spec=grid_spec,
        compiler_params=_compiler_params(),
    )(x3, l3["w"], l3["b"], l3["scale"], l3["shift"], l3["sel"],
      l4["w"], l4["b"], l4["scale"], l4["shift"], l4["sel"],
      l5["w"], l5["b"])


# ---------------------------------------------------------------------------
# Host-side parameter folding
# ---------------------------------------------------------------------------

def _fold_w_nhcw(w, cin_pad):
    """OIHW -> (Cout, K*K*Cin_pad) bf16, column order (r, c, ci)."""
    cout, cin, k, _ = w.shape
    w = jnp.pad(w, ((0, 0), (0, cin_pad - cin), (0, 0), (0, 0)))
    w = jnp.transpose(w, (0, 2, 3, 1)).reshape(cout, k * k * cin_pad)
    return w.astype(jnp.bfloat16)


def _fold_w_cl(w):
    """OIHW -> (K*K*Cin, Cout) bf16, row order (r, c, ci)."""
    cout, cin, k, _ = w.shape
    w = jnp.transpose(w, (2, 3, 1, 0)).reshape(k * k * cin, cout)
    return w.astype(jnp.bfloat16)


def _pool_select_nhcw(wc):
    """(Wc-2, Wp) 0/1 matrix selecting every third lane (right-multiplied)."""
    wp = wc // 3
    s = jnp.zeros((wc - 2, wp), jnp.float32)
    s = s.at[3 * jnp.arange(wp), jnp.arange(wp)].set(1.0)
    return s.astype(jnp.bfloat16)


def _pool_select_cl(wc):
    """(Wp, Wc-2) 0/1 matrix selecting every third sublane (left-multiplied)."""
    wp = wc // 3
    s = jnp.zeros((wp, wc - 2), jnp.float32)
    s = s.at[jnp.arange(wp), 3 * jnp.arange(wp)].set(1.0)
    return s.astype(jnp.bfloat16)


def prepare_kernel_params(params, spatial):
    """Folds canonical (OIHW + bias + BN scale/shift) params into kernel layouts."""
    c1 = spatial - 2
    p1 = c1 // 3
    c2 = p1 - 2
    p2 = c2 // 3
    c3 = p2 - 4
    c4 = (c3 // 3) - 4

    col = lambda v: v.reshape(-1, 1).astype(jnp.float32)
    row = lambda v: v.reshape(1, -1).astype(jnp.float32)

    kp = {
        "l1": dict(w=_fold_w_nhcw(params[0]["w"], 16), b=col(params[0]["b"]),
                   scale=col(params[0]["scale"]), shift=col(params[0]["shift"]),
                   sel=_pool_select_nhcw(c1)),
        "l2": dict(w=_fold_w_nhcw(params[1]["w"], 16), b=col(params[1]["b"]),
                   scale=col(params[1]["scale"]), shift=col(params[1]["shift"]),
                   sel=_pool_select_nhcw(c2)),
        "l3": dict(w=_fold_w_cl(params[2]["w"]), b=row(params[2]["b"]),
                   scale=row(params[2]["scale"]), shift=row(params[2]["shift"]),
                   sel=_pool_select_cl(c3)),
        "l4": dict(w=_fold_w_cl(params[3]["w"]), b=row(params[3]["b"]),
                   scale=row(params[3]["scale"]), shift=row(params[3]["shift"]),
                   sel=_pool_select_cl(c4)),
        "l5": dict(w=_fold_w_cl(params[4]["w"]), b=row(params[4]["b"])),
    }
    return kp


def encoder_forward(x_nchw, kp):
    """x_nchw: (N, 3, H, W) f32.  Returns (N, 256, 1, 1) f32."""
    N, C, _, _ = x_nchw.shape
    x = jnp.transpose(x_nchw, (0, 2, 1, 3))                   # NCHW -> NHCW
    x = jnp.pad(x, ((0, 0), (0, 0), (0, 16 - C), (0, 0)))     # pad Cin 3 -> 16
    x = x.astype(jnp.bfloat16)
    h2 = shallow_call(x, kp["l1"], kp["l2"])                  # (N, 52, 32, 52) NHCW
    h3 = jnp.transpose(h2, (0, 1, 3, 2))                      # -> channels-last NHWC
    out = deep_call(h3, kp["l3"], kp["l4"], kp["l5"])         # (N, 1, 256) f32
    return out.reshape(N, -1, 1, 1)                           # (N, 256, 1, 1)


# ---------------------------------------------------------------------------
# Pure-JAX reference (same eval-mode semantics) + parameter init
# ---------------------------------------------------------------------------

def reference_forward(x_nchw, params):
    h = x_nchw
    for p in params:
        h = jax.lax.conv_general_dilated(
            h, p["w"], (1, 1), "VALID",
            dimension_numbers=("NCHW", "OIHW", "NCHW"),
            precision=jax.lax.Precision.HIGHEST)
        h = h + p["b"].reshape(1, -1, 1, 1)
        h = jnp.where(h > 0, h, NEG_SLOPE * h)
        if "scale" in p:                                      # blocks 1-4: BN + pool
            h = h * p["scale"].reshape(1, -1, 1, 1) + p["shift"].reshape(1, -1, 1, 1)
            h = jax.lax.reduce_window(h, -jnp.inf, jax.lax.max,
                                      (1, 1, 3, 3), (1, 1, 3, 3), "VALID")
    return h


def init_params(key):
    specs = [(3, 16, 3), (16, 32, 3), (32, 64, 5), (64, 128, 5), (128, 256, 4)]
    keys = jax.random.split(key, 3 * len(specs))
    params = []
    for i, (cin, cout, k) in enumerate(specs):
        kw, kb, kbn = keys[3 * i], keys[3 * i + 1], keys[3 * i + 2]
        w = jax.random.normal(kw, (cout, cin, k, k), jnp.float32) / np.sqrt(cin * k * k)
        b = 0.05 * jax.random.normal(kb, (cout,), jnp.float32)
        p = {"w": w, "b": b}
        if i < 4:                                             # conv blocks with BN
            k1, k2, k3, k4 = jax.random.split(kbn, 4)
            gamma = 1.0 + 0.1 * jax.random.normal(k1, (cout,), jnp.float32)
            beta = 0.1 * jax.random.normal(k2, (cout,), jnp.float32)
            mean = 0.1 * jax.random.normal(k3, (cout,), jnp.float32)
            var = 1.0 + 0.1 * jax.random.uniform(k4, (cout,), jnp.float32)
            p["scale"] = gamma / jnp.sqrt(var + BN_EPS)
            p["shift"] = beta - mean * p["scale"]
        params.append(p)
    return params


if __name__ == "__main__":
    # 476 is the minimum spatial size this module supports (the final k=4 conv
    # needs at least a 4x4 input after the four conv+pool blocks).
    N, H = 2, 476
    key = jax.random.PRNGKey(0)
    kx, kparam = jax.random.split(key)
    x_nchw = jax.random.normal(kx, (N, 3, H, H), jnp.float32)

    params = init_params(kparam)
    kparams = prepare_kernel_params(params, H)

    out = encoder_forward(x_nchw, kparams)
    out = jax.block_until_ready(out)
    assert out.shape == (N, 256, 1, 1), out.shape

    ref = reference_forward(x_nchw, params)
    ref = jax.block_until_ready(ref)
    max_err = float(jnp.max(jnp.abs(out - ref)))
    assert bool(jnp.allclose(out, ref, rtol=3e-2, atol=3e-2)), f"max_err={max_err}"

    print("KERNEL_OK")
</pallas_src>

<mosaic_0001>
module attributes {stable_mosaic.version = 11 : i64} {
  func.func @kernel(%arg0: i32, %arg1: memref<1x476x16x476xbf16, #tpu.memory_space<vmem>>, %arg2: memref<16x144xbf16, #tpu.memory_space<vmem>>, %arg3: memref<16x1xf32, #tpu.memory_space<vmem>>, %arg4: memref<16x1xf32, #tpu.memory_space<vmem>>, %arg5: memref<16x1xf32, #tpu.memory_space<vmem>>, %arg6: memref<472x158xbf16, #tpu.memory_space<vmem>>, %arg7: memref<32x144xbf16, #tpu.memory_space<vmem>>, %arg8: memref<32x1xf32, #tpu.memory_space<vmem>>, %arg9: memref<32x1xf32, #tpu.memory_space<vmem>>, %arg10: memref<32x1xf32, #tpu.memory_space<vmem>>, %arg11: memref<154x52xbf16, #tpu.memory_space<vmem>>, %arg12: memref<1x52x32x52xbf16, #tpu.memory_space<vmem>>, %arg13: memref<158x16x158xbf16, #tpu.memory_space<vmem>>) attributes {dimension_semantics = [#tpu.dimension_semantics<parallel>], iteration_bounds = array<i64: 2>, scalar_prefetch = 0 : i64, scratch_operands = 1 : i64, tpu.core_type = #tpu.core_type<tc>, window_params = [{transform_indices = @transform_0, window_bounds = array<i64: 1, 476, 16, 476>}, {pipeline_mode = #tpu.pipeline_mode<synchronous>, transform_indices = @transform_1, window_bounds = array<i64: 16, 144>}, {pipeline_mode = #tpu.pipeline_mode<synchronous>, transform_indices = @transform_2, window_bounds = array<i64: 16, 1>}, {pipeline_mode = #tpu.pipeline_mode<synchronous>, transform_indices = @transform_3, window_bounds = array<i64: 16, 1>}, {pipeline_mode = #tpu.pipeline_mode<synchronous>, transform_indices = @transform_4, window_bounds = array<i64: 16, 1>}, {pipeline_mode = #tpu.pipeline_mode<synchronous>, transform_indices = @transform_5, window_bounds = array<i64: 472, 158>}, {pipeline_mode = #tpu.pipeline_mode<synchronous>, transform_indices = @transform_6, window_bounds = array<i64: 32, 144>}, {pipeline_mode = #tpu.pipeline_mode<synchronous>, transform_indices = @transform_7, window_bounds = array<i64: 32, 1>}, {pipeline_mode = #tpu.pipeline_mode<synchronous>, transform_indices = @transform_8, window_bounds = array<i64: 32, 1>}, {pipeline_mode = #tpu.pipeline_mode<synchronous>, transform_indices = @transform_9, window_bounds = array<i64: 32, 1>}, {pipeline_mode = #tpu.pipeline_mode<synchronous>, transform_indices = @transform_10, window_bounds = array<i64: 154, 52>}, {transform_indices = @transform_11, window_bounds = array<i64: 1, 52, 32, 52>}]} {
    %c0_i32 = arith.constant 0 : i32
    %c158_i32 = arith.constant 158 : i32
    %0 = arith.addi %c0_i32, %c158_i32 : i32
    %c1_i32 = arith.constant 1 : i32
    scf.for %arg14 = %c0_i32 to %0 step %c1_i32  : i32 {
      %c3_i32 = arith.constant 3 : i32
      %2 = arith.muli %c3_i32, %arg14 : i32
      %c0_i32_4 = arith.constant 0 : i32
      %3 = arith.addi %2, %c0_i32_4 : i32
      %c0 = arith.constant 0 : index
      %4 = arith.index_cast %3 : i32 to index
      %c0_5 = arith.constant 0 : index
      %c0_6 = arith.constant 0 : index
      %5 = vector.load %arg1[%c0, %4, %c0_5, %c0_6] : memref<1x476x16x476xbf16, #tpu.memory_space<vmem>>, vector<1x1x16x476xbf16>
      %6 = vector.shape_cast %5 : vector<1x1x16x476xbf16> to vector<16x476xbf16>
      %7 = vector.extract_strided_slice %6 {offsets = [0, 0], sizes = [16, 474], strides = [1, 1]} : vector<16x476xbf16> to vector<16x474xbf16>
      %8 = vector.extract_strided_slice %6 {offsets = [0, 1], sizes = [16, 474], strides = [1, 1]} : vector<16x476xbf16> to vector<16x474xbf16>
      %9 = vector.extract_strided_slice %6 {offsets = [0, 2], sizes = [16, 474], strides = [1, 1]} : vector<16x476xbf16> to vector<16x474xbf16>
      %c1_i32_7 = arith.constant 1 : i32
      %10 = arith.addi %2, %c1_i32_7 : i32
      %c0_8 = arith.constant 0 : index
      %11 = arith.index_cast %10 : i32 to index
      %c0_9 = arith.constant 0 : index
      %c0_10 = arith.constant 0 : index
      %12 = vector.load %arg1[%c0_8, %11, %c0_9, %c0_10] : memref<1x476x16x476xbf16, #tpu.memory_space<vmem>>, vector<1x1x16x476xbf16>
      %13 = vector.shape_cast %12 : vector<1x1x16x476xbf16> to vector<16x476xbf16>
      %14 = vector.extract_strided_slice %13 {offsets = [0, 0], sizes = [16, 474], strides = [1, 1]} : vector<16x476xbf16> to vector<16x474xbf16>
      %15 = vector.extract_strided_slice %13 {offsets = [0, 1], sizes = [16, 474], strides = [1, 1]} : vector<16x476xbf16> to vector<16x474xbf16>
      %16 = vector.extract_strided_slice %13 {offsets = [0, 2], sizes = [16, 474], strides = [1, 1]} : vector<16x476xbf16> to vector<16x474xbf16>
      %c2_i32 = arith.constant 2 : i32
      %17 = arith.addi %2, %c2_i32 : i32
      %c0_11 = arith.constant 0 : index
      %18 = arith.index_cast %17 : i32 to index
      %c0_12 = arith.constant 0 : index
      %c0_13 = arith.constant 0 : index
      %19 = vector.load %arg1[%c0_11, %18, %c0_12, %c0_13] : memref<1x476x16x476xbf16, #tpu.memory_space<vmem>>, vector<1x1x16x476xbf16>
      %20 = vector.shape_cast %19 : vector<1x1x16x476xbf16> to vector<16x476xbf16>
      %21 = vector.extract_strided_slice %20 {offsets = [0, 0], sizes = [16, 474], strides = [1, 1]} : vector<16x476xbf16> to vector<16x474xbf16>
      %22 = vector.extract_strided_slice %20 {offsets = [0, 1], sizes = [16, 474], strides = [1, 1]} : vector<16x476xbf16> to vector<16x474xbf16>
      %23 = vector.extract_strided_slice %20 {offsets = [0, 2], sizes = [16, 474], strides = [1, 1]} : vector<16x476xbf16> to vector<16x474xbf16>
      %24 = tpu.concatenate %7, %8, %9, %14, %15, %16, %21, %22, %23 in 0 : vector<16x474xbf16>, vector<16x474xbf16>, vector<16x474xbf16>, vector<16x474xbf16>, vector<16x474xbf16>, vector<16x474xbf16>, vector<16x474xbf16>, vector<16x474xbf16>, vector<16x474xbf16> -> vector<144x474xbf16>
      %c0_14 = arith.constant 0 : index
      %c0_15 = arith.constant 0 : index
      %25 = vector.load %arg2[%c0_14, %c0_15] : memref<16x144xbf16, #tpu.memory_space<vmem>>, vector<16x144xbf16>
      %cst = arith.constant dense<0.000000e+00> : vector<16x474xf32>
      %26 = tpu.matmul %25, %24, %cst {dimension_numbers = #tpu.dot_dimension_numbers<[1], [0], [0], [1], [0, 0, 1, 1], [], []>} : vector<16x144xbf16>, vector<144x474xbf16>, vector<16x474xf32> -> vector<16x474xf32>
      %c0_16 = arith.constant 0 : index
      %c0_17 = arith.constant 0 : index
      %27 = vector.load %arg3[%c0_16, %c0_17] : memref<16x1xf32, #tpu.memory_space<vmem>>, vector<16x1xf32>
      %28 = vector.broadcast %27 : vector<16x1xf32> to vector<16x474xf32>
      %29 = arith.addf %26, %28 : vector<16x474xf32>
      %cst_18 = arith.constant 0.000000e+00 : f32
      %30 = vector.broadcast %cst_18 : f32 to vector<16x474xf32>
      %31 = arith.cmpf ogt, %29, %30 : vector<16x474xf32>
      %cst_19 = arith.constant 1.000000e-01 : f32
      %32 = vector.broadcast %cst_19 : f32 to vector<16x474xf32>
      %33 = arith.mulf %32, %29 : vector<16x474xf32>
      %34 = arith.select %31, %29, %33 : vector<16x474xi1>, vector<16x474xf32>
      %c0_20 = arith.constant 0 : index
      %c0_21 = arith.constant 0 : index
      %35 = vector.load %arg4[%c0_20, %c0_21] : memref<16x1xf32, #tpu.memory_space<vmem>>, vector<16x1xf32>
      %36 = vector.broadcast %35 : vector<16x1xf32> to vector<16x474xf32>
      %37 = arith.mulf %34, %36 : vector<16x474xf32>
      %c0_22 = arith.constant 0 : index
      %c0_23 = arith.constant 0 : index
      %38 = vector.load %arg5[%c0_22, %c0_23] : memref<16x1xf32, #tpu.memory_space<vmem>>, vector<16x1xf32>
      %39 = vector.broadcast %38 : vector<16x1xf32> to vector<16x474xf32>
      %40 = arith.addf %37, %39 : vector<16x474xf32>
      %c3_i32_24 = arith.constant 3 : i32
      %41 = arith.muli %c3_i32_24, %arg14 : i32
      %c1_i32_25 = arith.constant 1 : i32
      %42 = arith.addi %41, %c1_i32_25 : i32
      %c0_i32_26 = arith.constant 0 : i32
      %43 = arith.addi %42, %c0_i32_26 : i32
      %c0_27 = arith.constant 0 : index
      %44 = arith.index_cast %43 : i32 to index
      %c0_28 = arith.constant 0 : index
      %c0_29 = arith.constant 0 : index
      %45 = vector.load %arg1[%c0_27, %44, %c0_28, %c0_29] : memref<1x476x16x476xbf16, #tpu.memory_space<vmem>>, vector<1x1x16x476xbf16>
      %46 = vector.shape_cast %45 : vector<1x1x16x476xbf16> to vector<16x476xbf16>
      %47 = vector.extract_strided_slice %46 {offsets = [0, 0], sizes = [16, 474], strides = [1, 1]} : vector<16x476xbf16> to vector<16x474xbf16>
      %48 = vector.extract_strided_slice %46 {offsets = [0, 1], sizes = [16, 474], strides = [1, 1]} : vector<16x476xbf16> to vector<16x474xbf16>
      %49 = vector.extract_strided_slice %46 {offsets = [0, 2], sizes = [16, 474], strides = [1, 1]} : vector<16x476xbf16> to vector<16x474xbf16>
      %c1_i32_30 = arith.constant 1 : i32
      %50 = arith.addi %42, %c1_i32_30 : i32
      %c0_31 = arith.constant 0 : index
      %51 = arith.index_cast %50 : i32 to index
      %c0_32 = arith.constant 0 : index
      %c0_33 = arith.constant 0 : index
      %52 = vector.load %arg1[%c0_31, %51, %c0_32, %c0_33] : memref<1x476x16x476xbf16, #tpu.memory_space<vmem>>, vector<1x1x16x476xbf16>
      %53 = vector.shape_cast %52 : vector<1x1x16x476xbf16> to vector<16x476xbf16>
      %54 = vector.extract_strided_slice %53 {offsets = [0, 0], sizes = [16, 474], strides = [1, 1]} : vector<16x476xbf16> to vector<16x474xbf16>
      %55 = vector.extract_strided_slice %53 {offsets = [0, 1], sizes = [16, 474], strides = [1, 1]} : vector<16x476xbf16> to vector<16x474xbf16>
      %56 = vector.extract_strided_slice %53 {offsets = [0, 2], sizes = [16, 474], strides = [1, 1]} : vector<16x476xbf16> to vector<16x474xbf16>
      %c2_i32_34 = arith.constant 2 : i32
      %57 = arith.addi %42, %c2_i32_34 : i32
      %c0_35 = arith.constant 0 : index
      %58 = arith.index_cast %57 : i32 to index
      %c0_36 = arith.constant 0 : index
      %c0_37 = arith.constant 0 : index
      %59 = vector.load %arg1[%c0_35, %58, %c0_36, %c0_37] : memref<1x476x16x476xbf16, #tpu.memory_space<vmem>>, vector<1x1x16x476xbf16>
      %60 = vector.shape_cast %59 : vector<1x1x16x476xbf16> to vector<16x476xbf16>
      %61 = vector.extract_strided_slice %60 {offsets = [0, 0], sizes = [16, 474], strides = [1, 1]} : vector<16x476xbf16> to vector<16x474xbf16>
      %62 = vector.extract_strided_slice %60 {offsets = [0, 1], sizes = [16, 474], strides = [1, 1]} : vector<16x476xbf16> to vector<16x474xbf16>
      %63 = vector.extract_strided_slice %60 {offsets = [0, 2], sizes = [16, 474], strides = [1, 1]} : vector<16x476xbf16> to vector<16x474xbf16>
      %64 = tpu.concatenate %47, %48, %49, %54, %55, %56, %61, %62, %63 in 0 : vector<16x474xbf16>, vector<16x474xbf16>, vector<16x474xbf16>, vector<16x474xbf16>, vector<16x474xbf16>, vector<16x474xbf16>, vector<16x474xbf16>, vector<16x474xbf16>, vector<16x474xbf16> -> vector<144x474xbf16>
      %c0_38 = arith.constant 0 : index
      %c0_39 = arith.constant 0 : index
      %65 = vector.load %arg2[%c0_38, %c0_39] : memref<16x144xbf16, #tpu.memory_space<vmem>>, vector<16x144xbf16>
      %cst_40 = arith.constant dense<0.000000e+00> : vector<16x474xf32>
      %66 = tpu.matmul %65, %64, %cst_40 {dimension_numbers = #tpu.dot_dimension_numbers<[1], [0], [0], [1], [0, 0, 1, 1], [], []>} : vector<16x144xbf16>, vector<144x474xbf16>, vector<16x474xf32> -> vector<16x474xf32>
      %c0_41 = arith.constant 0 : index
      %c0_42 = arith.constant 0 : index
      %67 = vector.load %arg3[%c0_41, %c0_42] : memref<16x1xf32, #tpu.memory_space<vmem>>, vector<16x1xf32>
      %68 = vector.broadcast %67 : vector<16x1xf32> to vector<16x474xf32>
      %69 = arith.addf %66, %68 : vector<16x474xf32>
      %cst_43 = arith.constant 0.000000e+00 : f32
      %70 = vector.broadcast %cst_43 : f32 to vector<16x474xf32>
      %71 = arith.cmpf ogt, %69, %70 : vector<16x474xf32>
      %cst_44 = arith.constant 1.000000e-01 : f32
      %72 = vector.broadcast %cst_44 : f32 to vector<16x474xf32>
      %73 = arith.mulf %72, %69 : vector<16x474xf32>
      %74 = arith.select %71, %69, %73 : vector<16x474xi1>, vector<16x474xf32>
      %c0_45 = arith.constant 0 : index
      %c0_46 = arith.constant 0 : index
      %75 = vector.load %arg4[%c0_45, %c0_46] : memref<16x1xf32, #tpu.memory_space<vmem>>, vector<16x1xf32>
      %76 = vector.broadcast %75 : vector<16x1xf32> to vector<16x474xf32>
      %77 = arith.mulf %74, %76 : vector<16x474xf32>
      %c0_47 = arith.constant 0 : index
      %c0_48 = arith.constant 0 : index
      %78 = vector.load %arg5[%c0_47, %c0_48] : memref<16x1xf32, #tpu.memory_space<vmem>>, vector<16x1xf32>
      %79 = vector.broadcast %78 : vector<16x1xf32> to vector<16x474xf32>
      %80 = arith.addf %77, %79 : vector<16x474xf32>
      %81 = arith.maximumf %40, %80 : vector<16x474xf32>
      %c3_i32_49 = arith.constant 3 : i32
      %82 = arith.muli %c3_i32_49, %arg14 : i32
      %c2_i32_50 = arith.constant 2 : i32
      %83 = arith.addi %82, %c2_i32_50 : i32
      %c0_i32_51 = arith.constant 0 : i32
      %84 = arith.addi %83, %c0_i32_51 : i32
      %c0_52 = arith.constant 0 : index
      %85 = arith.index_cast %84 : i32 to index
      %c0_53 = arith.constant 0 : index
      %c0_54 = arith.constant 0 : index
      %86 = vector.load %arg1[%c0_52, %85, %c0_53, %c0_54] : memref<1x476x16x476xbf16, #tpu.memory_space<vmem>>, vector<1x1x16x476xbf16>
      %87 = vector.shape_cast %86 : vector<1x1x16x476xbf16> to vector<16x476xbf16>
      %88 = vector.extract_strided_slice %87 {offsets = [0, 0], sizes = [16, 474], strides = [1, 1]} : vector<16x476xbf16> to vector<16x474xbf16>
      %89 = vector.extract_strided_slice %87 {offsets = [0, 1], sizes = [16, 474], strides = [1, 1]} : vector<16x476xbf16> to vector<16x474xbf16>
      %90 = vector.extract_strided_slice %87 {offsets = [0, 2], sizes = [16, 474], strides = [1, 1]} : vector<16x476xbf16> to vector<16x474xbf16>
      %c1_i32_55 = arith.constant 1 : i32
      %91 = arith.addi %83, %c1_i32_55 : i32
      %c0_56 = arith.constant 0 : index
      %92 = arith.index_cast %91 : i32 to index
      %c0_57 = arith.constant 0 : index
      %c0_58 = arith.constant 0 : index
      %93 = vector.load %arg1[%c0_56, %92, %c0_57, %c0_58] : memref<1x476x16x476xbf16, #tpu.memory_space<vmem>>, vector<1x1x16x476xbf16>
      %94 = vector.shape_cast %93 : vector<1x1x16x476xbf16> to vector<16x476xbf16>
      %95 = vector.extract_strided_slice %94 {offsets = [0, 0], sizes = [16, 474], strides = [1, 1]} : vector<16x476xbf16> to vector<16x474xbf16>
      %96 = vector.extract_strided_slice %94 {offsets = [0, 1], sizes = [16, 474], strides = [1, 1]} : vector<16x476xbf16> to vector<16x474xbf16>
      %97 = vector.extract_strided_slice %94 {offsets = [0, 2], sizes = [16, 474], strides = [1, 1]} : vector<16x476xbf16> to vector<16x474xbf16>
      %c2_i32_59 = arith.constant 2 : i32
      %98 = arith.addi %83, %c2_i32_59 : i32
      %c0_60 = arith.constant 0 : index
      %99 = arith.index_cast %98 : i32 to index
      %c0_61 = arith.constant 0 : index
      %c0_62 = arith.constant 0 : index
      %100 = vector.load %arg1[%c0_60, %99, %c0_61, %c0_62] : memref<1x476x16x476xbf16, #tpu.memory_space<vmem>>, vector<1x1x16x476xbf16>
      %101 = vector.shape_cast %100 : vector<1x1x16x476xbf16> to vector<16x476xbf16>
      %102 = vector.extract_strided_slice %101 {offsets = [0, 0], sizes = [16, 474], strides = [1, 1]} : vector<16x476xbf16> to vector<16x474xbf16>
      %103 = vector.extract_strided_slice %101 {offsets = [0, 1], sizes = [16, 474], strides = [1, 1]} : vector<16x476xbf16> to vector<16x474xbf16>
      %104 = vector.extract_strided_slice %101 {offsets = [0, 2], sizes = [16, 474], strides = [1, 1]} : vector<16x476xbf16> to vector<16x474xbf16>
      %105 = tpu.concatenate %88, %89, %90, %95, %96, %97, %102, %103, %104 in 0 : vector<16x474xbf16>, vector<16x474xbf16>, vector<16x474xbf16>, vector<16x474xbf16>, vector<16x474xbf16>, vector<16x474xbf16>, vector<16x474xbf16>, vector<16x474xbf16>, vector<16x474xbf16> -> vector<144x474xbf16>
      %c0_63 = arith.constant 0 : index
      %c0_64 = arith.constant 0 : index
      %106 = vector.load %arg2[%c0_63, %c0_64] : memref<16x144xbf16, #tpu.memory_space<vmem>>, vector<16x144xbf16>
      %cst_65 = arith.constant dense<0.000000e+00> : vector<16x474xf32>
      %107 = tpu.matmul %106, %105, %cst_65 {dimension_numbers = #tpu.dot_dimension_numbers<[1], [0], [0], [1], [0, 0, 1, 1], [], []>} : vector<16x144xbf16>, vector<144x474xbf16>, vector<16x474xf32> -> vector<16x474xf32>
      %c0_66 = arith.constant 0 : index
      %c0_67 = arith.constant 0 : index
      %108 = vector.load %arg3[%c0_66, %c0_67] : memref<16x1xf32, #tpu.memory_space<vmem>>, vector<16x1xf32>
      %109 = vector.broadcast %108 : vector<16x1xf32> to vector<16x474xf32>
      %110 = arith.addf %107, %109 : vector<16x474xf32>
      %cst_68 = arith.constant 0.000000e+00 : f32
      %111 = vector.broadcast %cst_68 : f32 to vector<16x474xf32>
      %112 = arith.cmpf ogt, %110, %111 : vector<16x474xf32>
      %cst_69 = arith.constant 1.000000e-01 : f32
      %113 = vector.broadcast %cst_69 : f32 to vector<16x474xf32>
      %114 = arith.mulf %113, %110 : vector<16x474xf32>
      %115 = arith.select %112, %110, %114 : vector<16x474xi1>, vector<16x474xf32>
      %c0_70 = arith.constant 0 : index
      %c0_71 = arith.constant 0 : index
      %116 = vector.load %arg4[%c0_70, %c0_71] : memref<16x1xf32, #tpu.memory_space<vmem>>, vector<16x1xf32>
      %117 = vector.broadcast %116 : vector<16x1xf32> to vector<16x474xf32>
      %118 = arith.mulf %115, %117 : vector<16x474xf32>
      %c0_72 = arith.constant 0 : index
      %c0_73 = arith.constant 0 : index
      %119 = vector.load %arg5[%c0_72, %c0_73] : memref<16x1xf32, #tpu.memory_space<vmem>>, vector<16x1xf32>
      %120 = vector.broadcast %119 : vector<16x1xf32> to vector<16x474xf32>
      %121 = arith.addf %118, %120 : vector<16x474xf32>
      %122 = arith.maximumf %81, %121 : vector<16x474xf32>
      %123 = vector.extract_strided_slice %122 {offsets = [0, 0], sizes = [16, 472], strides = [1, 1]} : vector<16x474xf32> to vector<16x472xf32>
      %124 = vector.extract_strided_slice %122 {offsets = [0, 1], sizes = [16, 472], strides = [1, 1]} : vector<16x474xf32> to vector<16x472xf32>
      %125 = vector.extract_strided_slice %122 {offsets = [0, 2], sizes = [16, 472], strides = [1, 1]} : vector<16x474xf32> to vector<16x472xf32>
      %126 = arith.maximumf %124, %125 : vector<16x472xf32>
      %127 = arith.maximumf %123, %126 : vector<16x472xf32>
      %128 = arith.truncf %127 : vector<16x472xf32> to vector<16x472xbf16>
      %c0_74 = arith.constant 0 : index
      %c0_75 = arith.constant 0 : index
      %129 = vector.load %arg6[%c0_74, %c0_75] : memref<472x158xbf16, #tpu.memory_space<vmem>>, vector<472x158xbf16>
      %cst_76 = arith.constant dense<0.000000e+00> : vector<16x158xf32>
      %130 = tpu.matmul %128, %129, %cst_76 {dimension_numbers = #tpu.dot_dimension_numbers<[1], [0], [0], [1], [0, 0, 1, 1], [], []>} : vector<16x472xbf16>, vector<472x158xbf16>, vector<16x158xf32> -> vector<16x158xf32>
      %131 = arith.truncf %130 : vector<16x158xf32> to vector<16x158xbf16>
      %132 = arith.index_cast %arg14 : i32 to index
      %c0_77 = arith.constant 0 : index
      %c0_78 = arith.constant 0 : index
      %133 = vector.load %arg13[%132, %c0_77, %c0_78] : memref<158x16x158xbf16, #tpu.memory_space<vmem>>, vector<1x16x158xbf16>
      %134 = vector.shape_cast %133 : vector<1x16x158xbf16> to vector<16x158xbf16>
      %135 = vector.shape_cast %131 : vector<16x158xbf16> to vector<1x16x158xbf16>
      tpu.vector_store %arg13[%132, %c0_77, %c0_78], %135 {strides = array<i32>} : memref<158x16x158xbf16, #tpu.memory_space<vmem>>, vector<1x16x158xbf16>,
    }
    %c158_i32_0 = arith.constant 158 : i32
    %c0_i32_1 = arith.constant 0 : i32
    %c52_i32 = arith.constant 52 : i32
    %1 = arith.addi %c0_i32_1, %c52_i32 : i32
    %c1_i32_2 = arith.constant 1 : i32
    scf.for %arg14 = %c0_i32_1 to %1 step %c1_i32_2  : i32 {
      %c3_i32 = arith.constant 3 : i32
      %2 = arith.muli %c3_i32, %arg14 : i32
      %c0_i32_4 = arith.constant 0 : i32
      %3 = arith.addi %2, %c0_i32_4 : i32
      %4 = arith.index_cast %3 : i32 to index
      %c0 = arith.constant 0 : index
      %c0_5 = arith.constant 0 : index
      %5 = vector.load %arg13[%4, %c0, %c0_5] : memref<158x16x158xbf16, #tpu.memory_space<vmem>>, vector<1x16x158xbf16>
      %6 = vector.shape_cast %5 : vector<1x16x158xbf16> to vector<16x158xbf16>
      %7 = vector.extract_strided_slice %6 {offsets = [0, 0], sizes = [16, 156], strides = [1, 1]} : vector<16x158xbf16> to vector<16x156xbf16>
      %8 = vector.extract_strided_slice %6 {offsets = [0, 1], sizes = [16, 156], strides = [1, 1]} : vector<16x158xbf16> to vector<16x156xbf16>
      %9 = vector.extract_strided_slice %6 {offsets = [0, 2], sizes = [16, 156], strides = [1, 1]} : vector<16x158xbf16> to vector<16x156xbf16>
      %c1_i32_6 = arith.constant 1 : i32
      %10 = arith.addi %2, %c1_i32_6 : i32
      %11 = arith.index_cast %10 : i32 to index
      %c0_7 = arith.constant 0 : index
      %c0_8 = arith.constant 0 : index
      %12 = vector.load %arg13[%11, %c0_7, %c0_8] : memref<158x16x158xbf16, #tpu.memory_space<vmem>>, vector<1x16x158xbf16>
      %13 = vector.shape_cast %12 : vector<1x16x158xbf16> to vector<16x158xbf16>
      %14 = vector.extract_strided_slice %13 {offsets = [0, 0], sizes = [16, 156], strides = [1, 1]} : vector<16x158xbf16> to vector<16x156xbf16>
      %15 = vector.extract_strided_slice %13 {offsets = [0, 1], sizes = [16, 156], strides = [1, 1]} : vector<16x158xbf16> to vector<16x156xbf16>
      %16 = vector.extract_strided_slice %13 {offsets = [0, 2], sizes = [16, 156], strides = [1, 1]} : vector<16x158xbf16> to vector<16x156xbf16>
      %c2_i32 = arith.constant 2 : i32
      %17 = arith.addi %2, %c2_i32 : i32
      %18 = arith.index_cast %17 : i32 to index
      %c0_9 = arith.constant 0 : index
      %c0_10 = arith.constant 0 : index
      %19 = vector.load %arg13[%18, %c0_9, %c0_10] : memref<158x16x158xbf16, #tpu.memory_space<vmem>>, vector<1x16x158xbf16>
      %20 = vector.shape_cast %19 : vector<1x16x158xbf16> to vector<16x158xbf16>
      %21 = vector.extract_strided_slice %20 {offsets = [0, 0], sizes = [16, 156], strides = [1, 1]} : vector<16x158xbf16> to vector<16x156xbf16>
      %22 = vector.extract_strided_slice %20 {offsets = [0, 1], sizes = [16, 156], strides = [1, 1]} : vector<16x158xbf16> to vector<16x156xbf16>
      %23 = vector.extract_strided_slice %20 {offsets = [0, 2], sizes = [16, 156], strides = [1, 1]} : vector<16x158xbf16> to vector<16x156xbf16>
      %24 = tpu.concatenate %7, %8, %9, %14, %15, %16, %21, %22, %23 in 0 : vector<16x156xbf16>, vector<16x156xbf16>, vector<16x156xbf16>, vector<16x156xbf16>, vector<16x156xbf16>, vector<16x156xbf16>, vector<16x156xbf16>, vector<16x156xbf16>, vector<16x156xbf16> -> vector<144x156xbf16>
      %c0_11 = arith.constant 0 : index
      %c0_12 = arith.constant 0 : index
      %25 = vector.load %arg7[%c0_11, %c0_12] : memref<32x144xbf16, #tpu.memory_space<vmem>>, vector<32x144xbf16>
      %cst = arith.constant dense<0.000000e+00> : vector<32x156xf32>
      %26 = tpu.matmul %25, %24, %cst {dimension_numbers = #tpu.dot_dimension_numbers<[1], [0], [0], [1], [0, 0, 1, 1], [], []>} : vector<32x144xbf16>, vector<144x156xbf16>, vector<32x156xf32> -> vector<32x156xf32>
      %c0_13 = arith.constant 0 : index
      %c0_14 = arith.constant 0 : index
      %27 = vector.load %arg8[%c0_13, %c0_14] : memref<32x1xf32, #tpu.memory_space<vmem>>, vector<32x1xf32>
      %28 = vector.broadcast %27 : vector<32x1xf32> to vector<32x156xf32>
      %29 = arith.addf %26, %28 : vector<32x156xf32>
      %cst_15 = arith.constant 0.000000e+00 : f32
      %30 = vector.broadcast %cst_15 : f32 to vector<32x156xf32>
      %31 = arith.cmpf ogt, %29, %30 : vector<32x156xf32>
      %cst_16 = arith.constant 1.000000e-01 : f32
      %32 = vector.broadcast %cst_16 : f32 to vector<32x156xf32>
      %33 = arith.mulf %32, %29 : vector<32x156xf32>
      %34 = arith.select %31, %29, %33 : vector<32x156xi1>, vector<32x156xf32>
      %c0_17 = arith.constant 0 : index
      %c0_18 = arith.constant 0 : index
      %35 = vector.load %arg9[%c0_17, %c0_18] : memref<32x1xf32, #tpu.memory_space<vmem>>, vector<32x1xf32>
      %36 = vector.broadcast %35 : vector<32x1xf32> to vector<32x156xf32>
      %37 = arith.mulf %34, %36 : vector<32x156xf32>
      %c0_19 = arith.constant 0 : index
      %c0_20 = arith.constant 0 : index
      %38 = vector.load %arg10[%c0_19, %c0_20] : memref<32x1xf32, #tpu.memory_space<vmem>>, vector<32x1xf32>
      %39 = vector.broadcast %38 : vector<32x1xf32> to vector<32x156xf32>
      %40 = arith.addf %37, %39 : vector<32x156xf32>
      %c3_i32_21 = arith.constant 3 : i32
      %41 = arith.muli %c3_i32_21, %arg14 : i32
      %c1_i32_22 = arith.constant 1 : i32
      %42 = arith.addi %41, %c1_i32_22 : i32
      %c0_i32_23 = arith.constant 0 : i32
      %43 = arith.addi %42, %c0_i32_23 : i32
      %44 = arith.index_cast %43 : i32 to index
      %c0_24 = arith.constant 0 : index
      %c0_25 = arith.constant 0 : index
      %45 = vector.load %arg13[%44, %c0_24, %c0_25] : memref<158x16x158xbf16, #tpu.memory_space<vmem>>, vector<1x16x158xbf16>
      %46 = vector.shape_cast %45 : vector<1x16x158xbf16> to vector<16x158xbf16>
      %47 = vector.extract_strided_slice %46 {offsets = [0, 0], sizes = [16, 156], strides = [1, 1]} : vector<16x158xbf16> to vector<16x156xbf16>
      %48 = vector.extract_strided_slice %46 {offsets = [0, 1], sizes = [16, 156], strides = [1, 1]} : vector<16x158xbf16> to vector<16x156xbf16>
      %49 = vector.extract_strided_slice %46 {offsets = [0, 2], sizes = [16, 156], strides = [1, 1]} : vector<16x158xbf16> to vector<16x156xbf16>
      %c1_i32_26 = arith.constant 1 : i32
      %50 = arith.addi %42, %c1_i32_26 : i32
      %51 = arith.index_cast %50 : i32 to index
      %c0_27 = arith.constant 0 : index
      %c0_28 = arith.constant 0 : index
      %52 = vector.load %arg13[%51, %c0_27, %c0_28] : memref<158x16x158xbf16, #tpu.memory_space<vmem>>, vector<1x16x158xbf16>
      %53 = vector.shape_cast %52 : vector<1x16x158xbf16> to vector<16x158xbf16>
      %54 = vector.extract_strided_slice %53 {offsets = [0, 0], sizes = [16, 156], strides = [1, 1]} : vector<16x158xbf16> to vector<16x156xbf16>
      %55 = vector.extract_strided_slice %53 {offsets = [0, 1], sizes = [16, 156], strides = [1, 1]} : vector<16x158xbf16> to vector<16x156xbf16>
      %56 = vector.extract_strided_slice %53 {offsets = [0, 2], sizes = [16, 156], strides = [1, 1]} : vector<16x158xbf16> to vector<16x156xbf16>
      %c2_i32_29 = arith.constant 2 : i32
      %57 = arith.addi %42, %c2_i32_29 : i32
      %58 = arith.index_cast %57 : i32 to index
      %c0_30 = arith.constant 0 : index
      %c0_31 = arith.constant 0 : index
      %59 = vector.load %arg13[%58, %c0_30, %c0_31] : memref<158x16x158xbf16, #tpu.memory_space<vmem>>, vector<1x16x158xbf16>
      %60 = vector.shape_cast %59 : vector<1x16x158xbf16> to vector<16x158xbf16>
      %61 = vector.extract_strided_slice %60 {offsets = [0, 0], sizes = [16, 156], strides = [1, 1]} : vector<16x158xbf16> to vector<16x156xbf16>
      %62 = vector.extract_strided_slice %60 {offsets = [0, 1], sizes = [16, 156], strides = [1, 1]} : vector<16x158xbf16> to vector<16x156xbf16>
      %63 = vector.extract_strided_slice %60 {offsets = [0, 2], sizes = [16, 156], strides = [1, 1]} : vector<16x158xbf16> to vector<16x156xbf16>
      %64 = tpu.concatenate %47, %48, %49, %54, %55, %56, %61, %62, %63 in 0 : vector<16x156xbf16>, vector<16x156xbf16>, vector<16x156xbf16>, vector<16x156xbf16>, vector<16x156xbf16>, vector<16x156xbf16>, vector<16x156xbf16>, vector<16x156xbf16>, vector<16x156xbf16> -> vector<144x156xbf16>
      %c0_32 = arith.constant 0 : index
      %c0_33 = arith.constant 0 : index
      %65 = vector.load %arg7[%c0_32, %c0_33] : memref<32x144xbf16, #tpu.memory_space<vmem>>, vector<32x144xbf16>
      %cst_34 = arith.constant dense<0.000000e+00> : vector<32x156xf32>
      %66 = tpu.matmul %65, %64, %cst_34 {dimension_numbers = #tpu.dot_dimension_numbers<[1], [0], [0], [1], [0, 0, 1, 1], [], []>} : vector<32x144xbf16>, vector<144x156xbf16>, vector<32x156xf32> -> vector<32x156xf32>
      %c0_35 = arith.constant 0 : index
      %c0_36 = arith.constant 0 : index
      %67 = vector.load %arg8[%c0_35, %c0_36] : memref<32x1xf32, #tpu.memory_space<vmem>>, vector<32x1xf32>
      %68 = vector.broadcast %67 : vector<32x1xf32> to vector<32x156xf32>
      %69 = arith.addf %66, %68 : vector<32x156xf32>
      %cst_37 = arith.constant 0.000000e+00 : f32
      %70 = vector.broadcast %cst_37 : f32 to vector<32x156xf32>
      %71 = arith.cmpf ogt, %69, %70 : vector<32x156xf32>
      %cst_38 = arith.constant 1.000000e-01 : f32
      %72 = vector.broadcast %cst_38 : f32 to vector<32x156xf32>
      %73 = arith.mulf %72, %69 : vector<32x156xf32>
      %74 = arith.select %71, %69, %73 : vector<32x156xi1>, vector<32x156xf32>
      %c0_39 = arith.constant 0 : index
      %c0_40 = arith.constant 0 : index
      %75 = vector.load %arg9[%c0_39, %c0_40] : memref<32x1xf32, #tpu.memory_space<vmem>>, vector<32x1xf32>
      %76 = vector.broadcast %75 : vector<32x1xf32> to vector<32x156xf32>
      %77 = arith.mulf %74, %76 : vector<32x156xf32>
      %c0_41 = arith.constant 0 : index
      %c0_42 = arith.constant 0 : index
      %78 = vector.load %arg10[%c0_41, %c0_42] : memref<32x1xf32, #tpu.memory_space<vmem>>, vector<32x1xf32>
      %79 = vector.broadcast %78 : vector<32x1xf32> to vector<32x156xf32>
      %80 = arith.addf %77, %79 : vector<32x156xf32>
      %81 = arith.maximumf %40, %80 : vector<32x156xf32>
      %c3_i32_43 = arith.constant 3 : i32
      %82 = arith.muli %c3_i32_43, %arg14 : i32
      %c2_i32_44 = arith.constant 2 : i32
      %83 = arith.addi %82, %c2_i32_44 : i32
      %c0_i32_45 = arith.constant 0 : i32
      %84 = arith.addi %83, %c0_i32_45 : i32
      %85 = arith.index_cast %84 : i32 to index
      %c0_46 = arith.constant 0 : index
      %c0_47 = arith.constant 0 : index
      %86 = vector.load %arg13[%85, %c0_46, %c0_47] : memref<158x16x158xbf16, #tpu.memory_space<vmem>>, vector<1x16x158xbf16>
      %87 = vector.shape_cast %86 : vector<1x16x158xbf16> to vector<16x158xbf16>
      %88 = vector.extract_strided_slice %87 {offsets = [0, 0], sizes = [16, 156], strides = [1, 1]} : vector<16x158xbf16> to vector<16x156xbf16>
      %89 = vector.extract_strided_slice %87 {offsets = [0, 1], sizes = [16, 156], strides = [1, 1]} : vector<16x158xbf16> to vector<16x156xbf16>
      %90 = vector.extract_strided_slice %87 {offsets = [0, 2], sizes = [16, 156], strides = [1, 1]} : vector<16x158xbf16> to vector<16x156xbf16>
      %c1_i32_48 = arith.constant 1 : i32
      %91 = arith.addi %83, %c1_i32_48 : i32
      %92 = arith.index_cast %91 : i32 to index
      %c0_49 = arith.constant 0 : index
      %c0_50 = arith.constant 0 : index
      %93 = vector.load %arg13[%92, %c0_49, %c0_50] : memref<158x16x158xbf16, #tpu.memory_space<vmem>>, vector<1x16x158xbf16>
      %94 = vector.shape_cast %93 : vector<1x16x158xbf16> to vector<16x158xbf16>
      %95 = vector.extract_strided_slice %94 {offsets = [0, 0], sizes = [16, 156], strides = [1, 1]} : vector<16x158xbf16> to vector<16x156xbf16>
      %96 = vector.extract_strided_slice %94 {offsets = [0, 1], sizes = [16, 156], strides = [1, 1]} : vector<16x158xbf16> to vector<16x156xbf16>
      %97 = vector.extract_strided_slice %94 {offsets = [0, 2], sizes = [16, 156], strides = [1, 1]} : vector<16x158xbf16> to vector<16x156xbf16>
      %c2_i32_51 = arith.constant 2 : i32
      %98 = arith.addi %83, %c2_i32_51 : i32
      %99 = arith.index_cast %98 : i32 to index
      %c0_52 = arith.constant 0 : index
      %c0_53 = arith.constant 0 : index
      %100 = vector.load %arg13[%99, %c0_52, %c0_53] : memref<158x16x158xbf16, #tpu.memory_space<vmem>>, vector<1x16x158xbf16>
      %101 = vector.shape_cast %100 : vector<1x16x158xbf16> to vector<16x158xbf16>
      %102 = vector.extract_strided_slice %101 {offsets = [0, 0], sizes = [16, 156], strides = [1, 1]} : vector<16x158xbf16> to vector<16x156xbf16>
      %103 = vector.extract_strided_slice %101 {offsets = [0, 1], sizes = [16, 156], strides = [1, 1]} : vector<16x158xbf16> to vector<16x156xbf16>
      %104 = vector.extract_strided_slice %101 {offsets = [0, 2], sizes = [16, 156], strides = [1, 1]} : vector<16x158xbf16> to vector<16x156xbf16>
      %105 = tpu.concatenate %88, %89, %90, %95, %96, %97, %102, %103, %104 in 0 : vector<16x156xbf16>, vector<16x156xbf16>, vector<16x156xbf16>, vector<16x156xbf16>, vector<16x156xbf16>, vector<16x156xbf16>, vector<16x156xbf16>, vector<16x156xbf16>, vector<16x156xbf16> -> vector<144x156xbf16>
      %c0_54 = arith.constant 0 : index
      %c0_55 = arith.constant 0 : index
      %106 = vector.load %arg7[%c0_54, %c0_55] : memref<32x144xbf16, #tpu.memory_space<vmem>>, vector<32x144xbf16>
      %cst_56 = arith.constant dense<0.000000e+00> : vector<32x156xf32>
      %107 = tpu.matmul %106, %105, %cst_56 {dimension_numbers = #tpu.dot_dimension_numbers<[1], [0], [0], [1], [0, 0, 1, 1], [], []>} : vector<32x144xbf16>, vector<144x156xbf16>, vector<32x156xf32> -> vector<32x156xf32>
      %c0_57 = arith.constant 0 : index
      %c0_58 = arith.constant 0 : index
      %108 = vector.load %arg8[%c0_57, %c0_58] : memref<32x1xf32, #tpu.memory_space<vmem>>, vector<32x1xf32>
      %109 = vector.broadcast %108 : vector<32x1xf32> to vector<32x156xf32>
      %110 = arith.addf %107, %109 : vector<32x156xf32>
      %cst_59 = arith.constant 0.000000e+00 : f32
      %111 = vector.broadcast %cst_59 : f32 to vector<32x156xf32>
      %112 = arith.cmpf ogt, %110, %111 : vector<32x156xf32>
      %cst_60 = arith.constant 1.000000e-01 : f32
      %113 = vector.broadcast %cst_60 : f32 to vector<32x156xf32>
      %114 = arith.mulf %113, %110 : vector<32x156xf32>
      %115 = arith.select %112, %110, %114 : vector<32x156xi1>, vector<32x156xf32>
      %c0_61 = arith.constant 0 : index
      %c0_62 = arith.constant 0 : index
      %116 = vector.load %arg9[%c0_61, %c0_62] : memref<32x1xf32, #tpu.memory_space<vmem>>, vector<32x1xf32>
      %117 = vector.broadcast %116 : vector<32x1xf32> to vector<32x156xf32>
      %118 = arith.mulf %115, %117 : vector<32x156xf32>
      %c0_63 = arith.constant 0 : index
      %c0_64 = arith.constant 0 : index
      %119 = vector.load %arg10[%c0_63, %c0_64] : memref<32x1xf32, #tpu.memory_space<vmem>>, vector<32x1xf32>
      %120 = vector.broadcast %119 : vector<32x1xf32> to vector<32x156xf32>
      %121 = arith.addf %118, %120 : vector<32x156xf32>
      %122 = arith.maximumf %81, %121 : vector<32x156xf32>
      %123 = vector.extract_strided_slice %122 {offsets = [0, 0], sizes = [32, 154], strides = [1, 1]} : vector<32x156xf32> to vector<32x154xf32>
      %124 = vector.extract_strided_slice %122 {offsets = [0, 1], sizes = [32, 154], strides = [1, 1]} : vector<32x156xf32> to vector<32x154xf32>
      %125 = vector.extract_strided_slice %122 {offsets = [0, 2], sizes = [32, 154], strides = [1, 1]} : vector<32x156xf32> to vector<32x154xf32>
      %126 = arith.maximumf %124, %125 : vector<32x154xf32>
      %127 = arith.maximumf %123, %126 : vector<32x154xf32>
      %128 = arith.truncf %127 : vector<32x154xf32> to vector<32x154xbf16>
      %c0_65 = arith.constant 0 : index
      %c0_66 = arith.constant 0 : index
      %129 = vector.load %arg11[%c0_65, %c0_66] : memref<154x52xbf16, #tpu.memory_space<vmem>>, vector<154x52xbf16>
      %cst_67 = arith.constant dense<0.000000e+00> : vector<32x52xf32>
      %130 = tpu.matmul %128, %129, %cst_67 {dimension_numbers = #tpu.dot_dimension_numbers<[1], [0], [0], [1], [0, 0, 1, 1], [], []>} : vector<32x154xbf16>, vector<154x52xbf16>, vector<32x52xf32> -> vector<32x52xf32>
      %131 = arith.truncf %130 : vector<32x52xf32> to vector<32x52xbf16>
      %c0_68 = arith.constant 0 : index
      %132 = arith.index_cast %arg14 : i32 to index
      %c0_69 = arith.constant 0 : index
      %c0_70 = arith.constant 0 : index
      %133 = vector.load %arg12[%c0_68, %132, %c0_69, %c0_70] : memref<1x52x32x52xbf16, #tpu.memory_space<vmem>>, vector<1x1x32x52xbf16>
      %134 = vector.shape_cast %133 : vector<1x1x32x52xbf16> to vector<32x52xbf16>
      %135 = vector.shape_cast %131 : vector<32x52xbf16> to vector<1x1x32x52xbf16>
      tpu.vector_store %arg12[%c0_68, %132, %c0_69, %c0_70], %135 {strides = array<i32>} : memref<1x52x32x52xbf16, #tpu.memory_space<vmem>>, vector<1x1x32x52xbf16>,
    }
    %c52_i32_3 = arith.constant 52 : i32
    return
  }
  func.func @transform_0(%arg0: i32) -> (i32, i32, i32, i32) {
    %c0_i32 = arith.constant 0 : i32
    %c0_i32_0 = arith.constant 0 : i32
    %c0_i32_1 = arith.constant 0 : i32
    %c0_i32_2 = arith.constant 0 : i32
    return %arg0, %c0_i32, %c0_i32_0, %c0_i32_1 : i32, i32, i32, i32
  }
  func.func @transform_1(%arg0: i32) -> (i32, i32) {
    %c0_i32 = arith.constant 0 : i32
    %c0_i32_0 = arith.constant 0 : i32
    %c0_i32_1 = arith.constant 0 : i32
    return %c0_i32, %c0_i32_0 : i32, i32
  }
  func.func @transform_2(%arg0: i32) -> (i32, i32) {
    %c0_i32 = arith.constant 0 : i32
    %c0_i32_0 = arith.constant 0 : i32
    %c0_i32_1 = arith.constant 0 : i32
    return %c0_i32, %c0_i32_0 : i32, i32
  }
  func.func @transform_3(%arg0: i32) -> (i32, i32) {
    %c0_i32 = arith.constant 0 : i32
    %c0_i32_0 = arith.constant 0 : i32
    %c0_i32_1 = arith.constant 0 : i32
    return %c0_i32, %c0_i32_0 : i32, i32
  }
  func.func @transform_4(%arg0: i32) -> (i32, i32) {
    %c0_i32 = arith.constant 0 : i32
    %c0_i32_0 = arith.constant 0 : i32
    %c0_i32_1 = arith.constant 0 : i32
    return %c0_i32, %c0_i32_0 : i32, i32
  }
  func.func @transform_5(%arg0: i32) -> (i32, i32) {
    %c0_i32 = arith.constant 0 : i32
    %c0_i32_0 = arith.constant 0 : i32
    %c0_i32_1 = arith.constant 0 : i32
    return %c0_i32, %c0_i32_0 : i32, i32
  }
  func.func @transform_6(%arg0: i32) -> (i32, i32) {
    %c0_i32 = arith.constant 0 : i32
    %c0_i32_0 = arith.constant 0 : i32
    %c0_i32_1 = arith.constant 0 : i32
    return %c0_i32, %c0_i32_0 : i32, i32
  }
  func.func @transform_7(%arg0: i32) -> (i32, i32) {
    %c0_i32 = arith.constant 0 : i32
    %c0_i32_0 = arith.constant 0 : i32
    %c0_i32_1 = arith.constant 0 : i32
    return %c0_i32, %c0_i32_0 : i32, i32
  }
  func.func @transform_8(%arg0: i32) -> (i32, i32) {
    %c0_i32 = arith.constant 0 : i32
    %c0_i32_0 = arith.constant 0 : i32
    %c0_i32_1 = arith.constant 0 : i32
    return %c0_i32, %c0_i32_0 : i32, i32
  }
  func.func @transform_9(%arg0: i32) -> (i32, i32) {
    %c0_i32 = arith.constant 0 : i32
    %c0_i32_0 = arith.constant 0 : i32
    %c0_i32_1 = arith.constant 0 : i32
    return %c0_i32, %c0_i32_0 : i32, i32
  }
  func.func @transform_10(%arg0: i32) -> (i32, i32) {
    %c0_i32 = arith.constant 0 : i32
    %c0_i32_0 = arith.constant 0 : i32
    %c0_i32_1 = arith.constant 0 : i32
    return %c0_i32, %c0_i32_0 : i32, i32
  }
  func.func @transform_11(%arg0: i32) -> (i32, i32, i32, i32) {
    %c0_i32 = arith.constant 0 : i32
    %c0_i32_0 = arith.constant 0 : i32
    %c0_i32_1 = arith.constant 0 : i32
    %c0_i32_2 = arith.constant 0 : i32
    return %arg0, %c0_i32, %c0_i32_0, %c0_i32_1 : i32, i32, i32, i32
  }
}

</mosaic_0001>

<bundles_post_ra>
// kernel: tpu_custom_call.1
= control target key start
LH: loop header
LB: loop body
LE: loop exit
PB: predicated region body
PF: predicated region fallthrough
CT: control target
= control target key end

     0   :  { %s4775_s0 = inlined_call_operand.hbm [shape: bf16[2,476,16,476], index: 0, kind: input, shape index: {}]   ;;  %s4776_s1 = inlined_call_operand.hbm [shape: bf16[16,144], index: 1, kind: input, shape index: {}]   ;;  %s4777_s2 = inlined_call_operand.vmem [shape: f32[16,1], index: 2, kind: input, shape index: {}]   ;;  %s4778_s3 = inlined_call_operand.vmem [shape: f32[16,1], index: 3, kind: input, shape index: {}]   ;;  %s4779_s4 = inlined_call_operand.vmem [shape: f32[16,1], index: 4, kind: input, shape index: {}]   ;;  %s4780_s5 = inlined_call_operand.vmem [shape: bf16[472,158], index: 5, kind: input, shape index: {}]   ;;  %s4781_s6 = inlined_call_operand.hbm [shape: bf16[32,144], index: 6, kind: input, shape index: {}]   ;;  %s4782_s7 = inlined_call_operand.vmem [shape: f32[32,1], index: 7, kind: input, shape index: {}]   ;;  %s4783_s8 = inlined_call_operand.vmem [shape: f32[32,1], index: 8, kind: input, shape index: {}]   ;;  %s4784_s9 = inlined_call_operand.vmem [shape: f32[32,1], index: 9, kind: input, shape index: {}]   ;;  %s4785_s10 = inlined_call_operand.vmem [shape: bf16[154,52], index: 10, kind: input, shape index: {}]   ;;  %s4786_s11 = inlined_call_operand.hbm [shape: bf16[2,52,32,52], index: 11, kind: output, shape index: {}]  }
   0x1   :  { %4794 = sst [smem:[#allocation16_spill]] %s4776_s1 }
   0x2   :  { %4795 = sst [smem:[#allocation17_spill]] %s4781_s6 }
   0x3   :  { %16 = vsyncpa [#allocation4], 0 }
   0x4   :  { %18 = vsyncpa [#allocation4 + $0x1], 0 }
   0x5   :  { %19 = vsyncpa [#allocation7], 0 }
   0x6   :  { %20 = vsyncpa [#allocation5], 0 }
   0x7   :  { %22 = vsyncpa [#allocation5 + $0x1], 0  ;;  %s3480_s17 = smov 0   ;;  %s3482_s18 = smov 0  }
   0x8   :  { %s3484_s19 = smov 0   ;;  %s3486_s20 = smov 0  }
   0x9 LB: > { %4796 = sst [smem:[#allocation13_spill]] %s3390_s19  ;;  %s3501_s21 = sadd.s32 4294967295, %s3394_s20   ;;  %s3394_s20 = sphi %s3486_s20, %s4815_s20   ;;  %s3390_s19 = sphi %s3484_s19, %s4817_s19   ;;  %s3386_s18 = sphi %s3482_s18, %s4819_s18   ;;  %s3382_s17 = sphi %s3480_s17, %s4818_s17  }
   0xa   : > { %s2711_s22 = sadd.s32 4294967294, %s3394_s20   ;;  %p48_p0 = scmp.ne.s32.totalorder %s3386_s18, %s3382_s17 }
   0xb   : > { %p4787_p1 = scmp.eq.s32.totalorder %s3501_s21, 0  ;;  %p288_p3 = scmp.eq.s32.totalorder %s2711_s22, 1 }
   0xc   : > { %p2712_p5 = scmp.ge.s32.totalorder %s3394_s20, 1  ;;  %p295_p7 = scmp.lt.s32.totalorder %s3394_s20, 3 }
   0xd   : > { %p3510_p4 = por %p4787_p1, %p48_p0  ;;  %p3515_p6 = por %p288_p3, %p48_p0 }
   0xe   : > { %p3520_p8 = pnand %p2712_p5, %p295_p7  ;;  %s3404_s26 = smov [#allocation6]  }
   0xf   : > { %s4797_s23 = scalar_select %p3510_p4, 1, 0 }
  0x10   : > { %s4798_s24 = scalar_select %p3515_p6, 1, 0 }
  0x11   : > { %s4799_s25 = scalar_select %p3520_p8, 1, 0 }
  0x12   : > { %s307_s27 = sshll.u32 %s3404_s26, 4  ;;  %p2918_p9 = pneg %p3520_p8  ;;  %s308_s27 = int_to_ptr.vmem [resolvable:$true] %s307_s27 }
  0x13   : > { %s3405_s29 = smov [#allocation8]   ;;  %s3249_s12 = scalar_lea.vmem %s308_s27, 256 }
  0x14   : > { %p3529_p11 = pnand %p2918_p9, %p4787_p1  ;;  %s332_s30 = sshll.u32 %s3405_s29, 4  ;;  %s333_s30 = int_to_ptr.vmem [resolvable:$true] %s332_s30 }
  0x15   : > { %p3250_p13 = scmp.ne.s32.totalorder %s308_s27, %s3249_s12  ;;  %p3257_p5 = scmp.lt.s32.totalorder %s308_s27, %s308_s27 }
  0x16   : > { %p3240_p12 = pneg %p3529_p11  ;;  %p3258_p7 = scmp.lt.s32.totalorder %s3249_s12, %s3249_s12 }
  0x18   : > { %p3252_p0 = pnand %p3250_p13, %p3240_p12  ;;  %p3259_p10 = por %p3258_p7, %p3257_p5 }
  0x1a   : > { %p3253_p3 = pneg %p3252_p0 }
  0x1c   : > { %p3260_p9 = pnand %p3259_p10, %p3253_p3 }
  0x1e   : > { %3263 = shalt.err (!%p3260_p9)
}
  0x1f   : > { %s3406_s13 = smov 128   ;;  %s3407_s14 = smov 8  }
  0x20   : > { %s4801_s1 = sld [smem:[#allocation16_spill]]  ;;  %s3275_s22 = scalar_lea.vmem %s333_s30, 512 }
  0x21   : > { %p3276_p1 = scmp.ne.s32.totalorder %s333_s30, %s3275_s22  ;;  %p3283_p2 = scmp.lt.s32.totalorder %s333_s30, %s333_s30 }
  0x22   : > { %p3284_p6 = scmp.lt.s32.totalorder %s3275_s22, %s3275_s22 }
  0x23   : > { %p3278_p13 = pnand %p3276_p1, %p3240_p12 }
  0x24   : > { %p3285_p5 = por %p3284_p6, %p3283_p2 }
  0x25   : > { %p3279_p0 = pneg %p3278_p13 }
  0x26   : > { %2921 = dma.hbm_to_vmem [thread:$0]  (!%p3529_p11), %s4801_s1, 256, %s308_s27, [#allocation7], %s3406_s13, %s3406_s13, %s3407_s14  }
  0x27   : > { %p3286_p10 = pnand %p3285_p5, %p3279_p0 }
  0x29   : > { %3289 = shalt.err (!%p3286_p10)
}
  0x2a   : > { %s4802_s6 = sld [smem:[#allocation17_spill]]  ;;  %s3552_s27 = sadd.s32 1, %s3394_s20  }
  0x2b   : > { %4803 = sst [smem:[#allocation14_spill]] %s3552_s27  ;;  %s35_s12 = sadd.s32 1, %s3390_s19 }
  0x2c   : > { %s32_s28 = ssub.s32 %s3394_s20, %s3552_s27  ;;  %p42_p1 = scmp.ne.s32.totalorder %s3390_s19, %s3386_s18 }
  0x2d   : > { %p33_p2 = scmp.eq.s32.totalorder %s32_s28, 0  ;;  %p43_p6 = scmp.eq.s32.totalorder %s3394_s20, 0 }
  0x2e   : > { %p4804_p12 = scmp.eq.s32.totalorder %s3501_s21, 1  ;;  %p2935_p7 = scmp.lt.s32.totalorder %s3394_s20, 2 }
  0x2f   : > { %s3568_s16 = scalar_select %p33_p2, %s3390_s19, %s35_s12  }
  0x30   : > { %2924 = dma.hbm_to_vmem [thread:$0]  (!%p3529_p11), %s4802_s6, 512, %s333_s30, [#allocation7], %s3406_s13, %s3406_s13, %s3407_s14  }
  0x31   : > { %p3562_p3 = por %p4804_p12, %p42_p1  ;;  %4806 = sst [smem:[#allocation15_spill]] %s3568_s16 }
  0x32   : > { %p44_p9 = por %p43_p6, %p42_p1  ;;  %s358_s22 = sand.u32 1, %s3390_s19  }
  0x33   : > { %s4805_s15 = scalar_select %p3562_p3, 1, 0 }
  0x34   : > { %s2901_s26 = smul.u32 15232, %s358_s22  ;;  %p3572_p11 = pnand %p2935_p7, %p44_p9 }
  0x35   : > { %s2902_s30 = smul.u32 243712, %s3394_s20  ;;  %s3583_s6 = scalar_lea.sflag [#allocation4], %s358_s22 }
  0x36   : > { %s362_s1 = scalar_lea.vmem [#allocation3], %s2901_s26  ;;  %p3292_p0 = pneg %p3572_p11 }
  0x37   : > { %s3579_s28 = scalar_lea.hbm %s4775_s0, %s2902_s30  ;;  %s369_s12 = sshll.u32 %s362_s1, 4  ;;  %s3581_s12 = int_to_ptr.vmem [resolvable:$true] %s369_s12 }
  0x38   : > { %s3290_s16 = scalar_lea.hbm %s3579_s28, 243712  ;;  %s3295_s30 = scalar_lea.hbm %s4775_s0, 487424 }
  0x39   : > { %p3291_p13 = scmp.ne.s32.totalorder %s3579_s28, %s3290_s16  ;;  %p3296_p1 = scmp.lt.s32.totalorder %s3579_s28, %s4775_s0 }
  0x3a   : > { %p3297_p2 = scmp.lt.s32.totalorder %s3295_s30, %s3290_s16 }
  0x3b   : > { %p3293_p5 = pnand %p3292_p0, %p3291_p13 }
  0x3c   : > { %p3298_p6 = por %p3297_p2, %p3296_p1 }
  0x3d   : > { %p3294_p10 = pneg %p3293_p5 }
  0x3f   : > { %p3299_p12 = pnand %p3298_p6, %p3294_p10 }
  0x41   : > { %3302 = shalt.err (!%p3299_p12)
}
  0x42   : > { %s3303_s1 = scalar_lea.vmem %s3581_s12, 243712  ;;  %s3408_s22 = smov [#allocation3]  }
  0x43   : > { %p3304_p7 = scmp.ne.s32.totalorder %s3581_s12, %s3303_s1  ;;  %s3308_s26 = sshll.u32 %s3408_s22, 4  ;;  %s3309_s26 = int_to_ptr.vmem [resolvable:$false] %s3308_s26 }
  0x44   : > { %s3310_s19 = scalar_lea.vmem %s3309_s26, 487424  ;;  %p3311_p5 = scmp.lt.s32.totalorder %s3581_s12, %s3309_s26 }
  0x45   : > { %p3306_p9 = pnand %p3304_p7, %p3292_p0  ;;  %p3312_p3 = scmp.lt.s32.totalorder %s3310_s19, %s3303_s1 }
  0x47   : > { %p3307_p13 = pneg %p3306_p9  ;;  %p3313_p4 = por %p3312_p3, %p3311_p5 }
  0x49   : > { %p3314_p8 = pnand %p3313_p4, %p3307_p13 }
  0x4b   : > { %3317 = shalt.err (!%p3314_p8)
}
  0x4c   : > { %s3409_s27 = smov 256   ;;  %s3410_s16 = smov 16  }
  0x4d   : > { %2928 = dma.hbm_to_vmem [thread:$0]  (!%p3572_p11), %s3579_s28, 243712, %s3581_s12, %s3583_s6, %s3409_s27, %s3409_s27, %s3410_s16  }
  0x4e   : > { %p4808_p0 = scmp.ne.s32.totalorder %s4799_s25, 0 }
  0x4f   : > { %s3607_s14 = sand.u32 (!%p4808_p0), 1, %s3386_s18   ;;  %p4809_p4 = scmp.ne.s32.totalorder (!%p4808_p0), %s4797_s23, 0 }
  0x50   : > { %381 = sbr.rel (%p4808_p0) target bundleno = 1878 (0x756), region = 64  ;;  %s384_s29 = scalar_lea.sflag (!%p4808_p0), [#allocation4], %s3607_s14 }
  0x51   : > { %s2903_s30 = smul.u32 (!%p4808_p0), 15232, %s3607_s14 }
  0x53   : > { %s3611_s1 = scalar_lea.vmem (!%p4808_p0), [#allocation3], %s2903_s30 }
  0x55   : > { %3369 = dma.done.wait (%p4809_p4), %s384_s29, 243712  }
  0x56   : > { %3371 = vsyncadd (%p4809_p4), %s384_s29, 4294723584  ;;  %p4810_p8 = scmp.eq.s32.totalorder %s3501_s21, 0 }
  0x58   : > { %3373 = dma.done.wait (%p4810_p8), [#allocation7], 768   ;;  %p4811_p3 = pmov %p4810_p8 }
  0x59   : > { %s2904_s6 = smul.u32 832, %s3607_s14  ;;  %s3624_s13 = smov 0  }
  0x5a   : > { %3375 = vsyncadd (%p4811_p3), [#allocation7], 4294966528 }
  0x5b   : > { %s3622_s25 = scalar_lea.vmem [#allocation9], %s2904_s6 }
  0x5c LB: >> { %s2891_s23 = smul.u32 96, %s3398_s13  ;;  %s3411_s12 = smov 127   ;;  %v3705_v12 = vld [vmem:[#allocation6 + $0x4] ss:$8 sps:$4 sm:$0xff]   ;;  %vm640_vm0 = vcmask 130048   ;;  %v3413_v22 = vmov 0   ;;  %s3398_s13 = sphi %s3624_s13, %s440_s13  }
  0x5d   : >> { %s3412_s22 = smov 126   ;;  %2746 = vmatprep.mubr.msk.bf16.mxu0 %vm640_vm0, %v3705_v12  ;;  %2747 = vmatprep.mubr.msk.bf16.mxu1 %vm640_vm0, %v3705_v12  ;;  %v620_v21 = vld [vmem:[%s4777_s2 + $0x8] sm:$0xff]  ;;  %v619_v23 = vld [vmem:[%s4777_s2] sm:$0xff]  ;;  %vm493_vm1 = vcmask 1039360   ;;  %vm509_vm2 = vcmask 1031168  }
  0x5e   : >> { %s3631_s28 = scalar_lea.vmem %s3611_s1, %s2891_s23 [#allocation3]  ;;  %3002 = vset.pattern.permute.xlu1 %v3413_v22  ;;  %3001 = vset.pattern.permute.xlu0 %v3413_v22  ;;  %v754_v24 = vld [vmem:[%s4778_s3] sm:$0xff]  ;;  %v755_v25 = vld [vmem:[%s4778_s3 + $0x8] sm:$0xff] }
  0x5f   : >> { %v3634_v0 = vld [vmem:[%s3631_s28 + $0x44] ss:$16 sps:$4 sm:$0xff]   ;;  %v3637_v1 = vld [vmem:[%s3631_s28 + $0x40] ss:$16 sps:$4 sm:$0xff]   ;;  %v3642_v2 = vld [vmem:[%s3631_s28 + $0x48] ss:$16 sps:$4 sm:$0xff]  }
  0x60   : >> { %589 = vrot.lane.b32.xlu0 %v3634_v0, %s3411_s12  ;;  %587 = vrot.lane.b32.xlu1 %v3637_v1, %s3411_s12  ;;  %v3647_v3 = vld [vmem:[%s3631_s28 + $0x4c] ss:$16 sps:$4 sm:$0xff]   ;;  %v3652_v4 = vld [vmem:[%s3631_s28 + $0x24] ss:$16 sps:$4 sm:$0xff]  }
  0x61   : >> { %v3657_v5 = vld [vmem:[%s3631_s28 + $0x28] ss:$16 sps:$4 sm:$0xff]   ;;  %v3662_v6 = vld [vmem:[%s3631_s28 + $0x20] ss:$16 sps:$4 sm:$0xff]   ;;  %v3667_v7 = vld [vmem:[%s3631_s28 + $0x2c] ss:$16 sps:$4 sm:$0xff]  }
  0x62   : >> { %v3678_v8 = vld [vmem:[%s3631_s28 + $0x4] ss:$16 sps:$4 sm:$0xff]   ;;  %v3681_v9 = vld [vmem:[%s3631_s28 + $0x8] ss:$16 sps:$4 sm:$0xff]   ;;  %v3688_v10 = vld [vmem:[%s3631_s28] ss:$16 sps:$4 sm:$0xff]  }
  0x63   : >> { %v3691_v11 = vld [vmem:[%s3631_s28 + $0xc] ss:$16 sps:$4 sm:$0xff]   ;;  %v3722_v13 = vld [vmem:[%s3631_s28 + $0x64] ss:$16 sps:$4 sm:$0xff]   ;;  %v3727_v14 = vld [vmem:[%s3631_s28 + $0x68] ss:$16 sps:$4 sm:$0xff]  }
  0x64   : >> { %591 = vrot.lane.b32.xlu0 %v3642_v2, %s3411_s12  ;;  %593 = vrot.lane.b32.xlu1 %v3647_v3, %s3411_s12  ;;  %v3732_v15 = vld [vmem:[%s3631_s28 + $0x60] ss:$16 sps:$4 sm:$0xff]   ;;  %v3737_v16 = vld [vmem:[%s3631_s28 + $0x6c] ss:$16 sps:$4 sm:$0xff]  }
  0x65   : >> { %v3750_v17 = vld [vmem:[%s3631_s28 + $0x84] ss:$16 sps:$4 sm:$0xff]   ;;  %v3755_v18 = vld [vmem:[%s3631_s28 + $0x88] ss:$16 sps:$4 sm:$0xff]   ;;  %v3760_v19 = vld [vmem:[%s3631_s28 + $0x80] ss:$16 sps:$4 sm:$0xff]  }
  0x66   : >> { %v3765_v20 = vld [vmem:[%s3631_s28 + $0x8c] ss:$16 sps:$4 sm:$0xff]   ;;  %v774_v26 = vld [vmem:[%s4779_s4] sm:$0xff] }
  0x67   : >> { %v775_v27 = vld [vmem:[%s4779_s4 + $0x8] sm:$0xff] }
  0x68   : >> { %554 = vrot.lane.b32.xlu0 %v3652_v4, %s3412_s22  ;;  %556 = vrot.lane.b32.xlu1 %v3657_v5, %s3412_s22 }
  0x6c   : >> { %552 = vrot.lane.b32.xlu0 %v3662_v6, %s3412_s22  ;;  %558 = vrot.lane.b32.xlu1 %v3667_v7, %s3412_s22 }
  0x70   : >> { %539 = vrot.lane.b32.xlu0 %v3652_v4, %s3411_s12  ;;  %541 = vrot.lane.b32.xlu1 %v3657_v5, %s3411_s12 }
  0x74   : >> { %537 = vrot.lane.b32.xlu0 %v3662_v6, %s3411_s12  ;;  %543 = vrot.lane.b32.xlu1 %v3667_v7, %s3411_s12 }
  0x78   : >> { %503 = vrot.lane.b32.xlu0 %v3678_v8, %s3412_s22  ;;  %505 = vrot.lane.b32.xlu1 %v3681_v9, %s3412_s22 }
  0x7c   : >> { %501 = vrot.lane.b32.xlu0 %v3688_v10, %s3412_s22  ;;  %507 = vrot.lane.b32.xlu1 %v3691_v11, %s3412_s22 }
  0x80   : >> { %487 = vrot.lane.b32.xlu0 %v3678_v8, %s3411_s12  ;;  %489 = vrot.lane.b32.xlu1 %v3681_v9, %s3411_s12 }
  0x84   : >> { %485 = vrot.lane.b32.xlu0 %v3688_v10, %s3411_s12  ;;  %491 = vrot.lane.b32.xlu1 %v3691_v11, %s3411_s12 }
  0x88   : >> { %604 = vrot.lane.b32.xlu0 %v3634_v0, %s3412_s22  ;;  %606 = vrot.lane.b32.xlu1 %v3642_v2, %s3412_s22 }
  0x8c   : >> { %602 = vrot.lane.b32.xlu0 %v3637_v1, %s3412_s22  ;;  %608 = vrot.lane.b32.xlu1 %v3647_v3, %s3412_s22 }
  0x90   : >> { %824 = vrot.lane.b32.xlu0 %v3722_v13, %s3411_s12  ;;  %826 = vrot.lane.b32.xlu1 %v3727_v14, %s3411_s12 }
  0x94   : >> { %822 = vrot.lane.b32.xlu0 %v3732_v15, %s3411_s12  ;;  %828 = vrot.lane.b32.xlu1 %v3737_v16, %s3411_s12 }
  0x98   : >> { %839 = vrot.lane.b32.xlu0 %v3722_v13, %s3412_s22  ;;  %841 = vrot.lane.b32.xlu1 %v3727_v14, %s3412_s22 }
  0x9c   : >> { %837 = vrot.lane.b32.xlu0 %v3732_v15, %s3412_s22  ;;  %843 = vrot.lane.b32.xlu1 %v3737_v16, %s3412_s22 }
  0xa0   : >> { %1016 = vrot.lane.b32.xlu0 %v3750_v17, %s3411_s12  ;;  %1018 = vrot.lane.b32.xlu1 %v3755_v18, %s3411_s12 }
  0xa4   : >> { %1014 = vrot.lane.b32.xlu0 %v3760_v19, %s3411_s12  ;;  %1020 = vrot.lane.b32.xlu1 %v3765_v20, %s3411_s12 }
  0xa8   : >> { %1031 = vrot.lane.b32.xlu0 %v3750_v17, %s3412_s22  ;;  %1033 = vrot.lane.b32.xlu1 %v3755_v18, %s3412_s22 }
  0xac   : >> { %1029 = vrot.lane.b32.xlu0 %v3760_v19, %s3412_s22  ;;  %1035 = vrot.lane.b32.xlu1 %v3765_v20, %s3412_s22 }
  0xb0   : >> { %628 = vperm.xlu1 %3002, %v620_v21   ;;  %623 = vperm.xlu0 %3001, %v619_v23  }
  0xb4   : >> { %758 = vperm.xlu1 %3002, %v754_v24   ;;  %763 = vperm.xlu0 %3001, %v755_v25  }
  0xb8   : >> { %778 = vperm.xlu1 %3002, %v774_v26   ;;  %783 = vperm.xlu0 %3001, %v775_v27  }
  0xd2   : >> { %v590_v28 = vpop.permute.xlu0 %589  ;;  %v588_v29 = vpop.permute.xlu1 %587 }
  0xd3   : >> { %v3809_v34 = vsel %vm493_vm1, %v588_v29, %v590_v28 }
  0xd6   : >> { %v592_v30 = vpop.permute.xlu0 %591  ;;  %v3797_v31 = vpop.permute.xlu1 %593 }
  0xd7   : >> { %v3800_v32 = vsel %vm493_vm1, %v590_v28, %v592_v30  ;;  %687 = vmatprep.subr.bf16.mxu1 %v3797_v31  ;;  %v3806_v33 = vsel %vm493_vm1, %v592_v30, %v3797_v31 }
  0xd8   : >> { %644 = vmatprep.subr.bf16.mxu0 %v3800_v32  ;;  %688 = vmatpush1.bf16.msra.mxu1 %v3806_v33 }
  0xd9   : >> { %645 = vmatpush1.bf16.msra.mxu0 %v3809_v34  ;;  %689 = vmatprep.subr.bf16.mxu1 %v3647_v3 }
  0xda   : >> { %v555_v35 = vpop.permute.xlu0 %554  ;;  %646 = vmatprep.subr.bf16.mxu0 %v3634_v0  ;;  %v557_v36 = vpop.permute.xlu1 %556 }
  0xdb   : >> { %v3818_v37 = vsel %vm509_vm2, %v555_v35, %v557_v36 }
  0xdc   : >> { %690 = vmatpush1.bf16.msra.mxu1 %v3642_v2 }
  0xdd   : >> { %647 = vmatpush1.bf16.msra.mxu0 %v3637_v1 }
  0xde   : >> { %648 = vmatprep.subr.bf16.mxu0 %v3818_v37  ;;  %v553_v38 = vpop.permute.xlu0 %552  ;;  %v3821_v39 = vpop.permute.xlu1 %558 }
  0xdf   : >> { %v3824_v40 = vsel %vm509_vm2, %v553_v38, %v555_v35  ;;  %691 = vmatprep.subr.bf16.mxu1 %v3821_v39  ;;  %v3829_v41 = vsel %vm509_vm2, %v557_v36, %v3821_v39 }
  0xe0   : >> { %692 = vmatpush1.bf16.msra.mxu1 %v3829_v41 }
  0xe1   : >> { %649 = vmatpush1.bf16.msra.mxu0 %v3824_v40 }
  0xe2   : >> { %v540_v42 = vpop.permute.xlu0 %539  ;;  %v542_v43 = vpop.permute.xlu1 %541 }
  0xe3   : >> { %v3834_v44 = vsel %vm493_vm1, %v540_v42, %v542_v43 }
  0xe4   : >> { %650 = vmatprep.subr.bf16.mxu0 %v3834_v44 }
  0xe6   : >> { %v538_v45 = vpop.permute.xlu0 %537  ;;  %v3837_v46 = vpop.permute.xlu1 %543 }
  0xe7   : >> { %v3840_v47 = vsel %vm493_vm1, %v538_v45, %v540_v42  ;;  %693 = vmatprep.subr.bf16.mxu1 %v3837_v46  ;;  %v3846_v48 = vsel %vm493_vm1, %v542_v43, %v3837_v46 }
  0xe8   : >> { %651 = vmatpush1.bf16.msra.mxu0 %v3840_v47  ;;  %694 = vmatpush1.bf16.msra.mxu1 %v3846_v48 }
  0xe9   : >> { %652 = vmatprep.subr.bf16.mxu0 %v3652_v4  ;;  %695 = vmatprep.subr.bf16.mxu1 %v3667_v7 }
  0xea   : >> { %v504_v49 = vpop.permute.xlu0 %503  ;;  %v506_v50 = vpop.permute.xlu1 %505 }
  0xeb   : >> { %v511_v51 = vsel %vm509_vm2, %v504_v49, %v506_v50 }
  0xec   : >> { %653 = vmatpush1.bf16.msra.mxu0 %v3662_v6  ;;  %696 = vmatpush1.bf16.msra.mxu1 %v3657_v5 }
  0xed   : >> { %654 = vmatprep.subr.bf16.mxu0 %v511_v51 }
  0xee   : >> { %v502_v52 = vpop.permute.xlu0 %501  ;;  %v508_v53 = vpop.permute.xlu1 %507 }
  0xef   : >> { %v510_v54 = vsel %vm509_vm2, %v502_v52, %v504_v49  ;;  %697 = vmatprep.subr.bf16.mxu1 %v508_v53  ;;  %v512_v55 = vsel %vm509_vm2, %v506_v50, %v508_v53 }
  0xf0   : >> { %655 = vmatpush1.bf16.msra.mxu0 %v510_v54  ;;  %698 = vmatpush1.bf16.msra.mxu1 %v512_v55 }
  0xf2   : >> { %v488_v56 = vpop.permute.xlu0 %487  ;;  %v490_v57 = vpop.permute.xlu1 %489 }
  0xf3   : >> { %v495_v58 = vsel %vm493_vm1, %v488_v56, %v490_v57 }
  0xf4   : >> { %656 = vmatprep.subr.bf16.mxu0 %v495_v58 }
  0xf6   : >> { %v486_v59 = vpop.permute.xlu0 %485  ;;  %v492_v60 = vpop.permute.xlu1 %491 }
  0xf7   : >> { %v494_v61 = vsel %vm493_vm1, %v486_v59, %v488_v56  ;;  %699 = vmatprep.subr.bf16.mxu1 %v492_v60  ;;  %v496_v62 = vsel %vm493_vm1, %v490_v57, %v492_v60 }
  0xf8   : >> { %657 = vmatpush1.bf16.msra.mxu0 %v494_v61  ;;  %700 = vmatpush1.bf16.msra.mxu1 %v496_v62 }
  0xf9   : >> { %658 = vmatprep.subr.bf16.mxu0 %v3678_v8  ;;  %701 = vmatprep.subr.bf16.mxu1 %v3691_v11  ;;  %v3872_v8 = vld [vmem:[#allocation6] ss:$8 sps:$4 sm:$0xff]  }
  0xfa   : >> { %v605_v63 = vpop.permute.xlu0 %604  ;;  %v607_v21 = vpop.permute.xlu1 %606 }
  0xfb   : >> { %v3863_v22 = vsel %vm509_vm2, %v605_v63, %v607_v21 }
  0xfc   : >> { %659 = vmatpush1.bf16.msra.mxu0 %v3688_v10  ;;  %702 = vmatpush1.bf16.msra.mxu1 %v3681_v9 }
  0xfd   : >> { %674 = vmatprep.subr.bf16.mxu0 %v3863_v22 }
  0xfe   : >> { %v603_v23 = vpop.permute.xlu0 %602  ;;  %v3867_v24 = vpop.permute.xlu1 %608 }
  0xff   : >> { %v3870_v25 = vsel %vm509_vm2, %v603_v23, %v605_v63  ;;  %717 = vmatprep.subr.bf16.mxu1 %v3867_v24  ;;  %v3878_v10 = vsel %vm509_vm2, %v607_v21, %v3867_v24 }
 0x100   : >> { %675 = vmatpush2.bf16.msra.mxu0 %v3870_v25  ;;  %718 = vmatpush2.bf16.msra.mxu1 %v3878_v10 }
 0x102   : >> { %v825_v9 = vpop.permute.xlu0 %824  ;;  %v827_v11 = vpop.permute.xlu1 %826 }
 0x103   : >> { %677 = vmatmul.mubr.bf16.vlgmr.msra.gmra.mxu0 %v3872_v8  ;;  %720 = vmatmul.mubr.bf16.vlgmr.msra.gmra.mxu1 %v3872_v8  ;;  %v3884_v26 = vsel %vm493_vm1, %v825_v9, %v827_v11 }
 0x104   : >> { %2757 = vmatprep.mubr.msk.bf16.mxu0 %vm640_vm0, %v3705_v12  ;;  %852 = vmatprep.subr.bf16.mxu0 %v3884_v26 }
 0x105   : >> { %2758 = vmatprep.mubr.msk.bf16.mxu1 %vm640_vm0, %v3705_v12 }
 0x106   : >> { %v823_v27 = vpop.permute.xlu0 %822  ;;  %v3891_v28 = vpop.permute.xlu1 %828 }
 0x107   : >> { %v3894_v29 = vsel %vm493_vm1, %v823_v27, %v825_v9  ;;  %895 = vmatprep.subr.bf16.mxu1 %v3891_v28  ;;  %v3900_v30 = vsel %vm493_vm1, %v827_v11, %v3891_v28 }
 0x108   : >> { %853 = vmatpush1.bf16.msra.mxu0 %v3894_v29  ;;  %896 = vmatpush1.bf16.msra.mxu1 %v3900_v30 }
 0x109   : >> { %854 = vmatprep.subr.bf16.mxu0 %v3722_v13  ;;  %897 = vmatprep.subr.bf16.mxu1 %v3737_v16 }
 0x10a   : >> { %v840_v35 = vpop.permute.xlu0 %839  ;;  %v842_v36 = vpop.permute.xlu1 %841 }
 0x10c   : >> { %855 = vmatpush1.bf16.msra.mxu0 %v3732_v15  ;;  %898 = vmatpush1.bf16.msra.mxu1 %v3727_v14 }
 0x10d   : >> { %856 = vmatprep.subr.bf16.mxu0 %v3863_v22  ;;  %899 = vmatprep.subr.bf16.mxu1 %v3867_v24 }
 0x10e   : >> { %v838_v38 = vpop.permute.xlu0 %837  ;;  %v844_v42 = vpop.permute.xlu1 %843 }
 0x110   : >> { %857 = vmatpush1.bf16.msra.mxu0 %v3870_v25  ;;  %900 = vmatpush1.bf16.msra.mxu1 %v3878_v10 }
 0x111   : >> { %858 = vmatprep.subr.bf16.mxu0 %v3800_v32  ;;  %901 = vmatprep.subr.bf16.mxu1 %v3797_v31 }
 0x112   : >> { %v1017_v43 = vpop.permute.xlu0 %1016 }
 0x114   : >> { %859 = vmatpush1.bf16.msra.mxu0 %v3809_v34  ;;  %902 = vmatpush1.bf16.msra.mxu1 %v3806_v33 }
 0x115   : >> { %860 = vmatprep.subr.bf16.mxu0 %v3634_v0  ;;  %903 = vmatprep.subr.bf16.mxu1 %v3647_v3 }
 0x118   : >> { %861 = vmatpush1.bf16.msra.mxu0 %v3637_v1  ;;  %904 = vmatpush1.bf16.msra.mxu1 %v3642_v2 }
 0x119   : >> { %862 = vmatprep.subr.bf16.mxu0 %v3818_v37  ;;  %905 = vmatprep.subr.bf16.mxu1 %v3821_v39  ;;  %v1019_v37 = vpop.permute.xlu1 %1018  ;;  %v846_v39 = vsel %vm509_vm2, %v840_v35, %v842_v36 }
 0x11c   : >> { %863 = vmatpush1.bf16.msra.mxu0 %v3824_v40  ;;  %906 = vmatpush1.bf16.msra.mxu1 %v3829_v41  ;;  %v1023_v40 = vsel %vm493_vm1, %v1017_v43, %v1019_v37  ;;  %v845_v41 = vsel %vm509_vm2, %v838_v38, %v840_v35 }
 0x11d   : >> { %864 = vmatprep.subr.bf16.mxu0 %v3834_v44  ;;  %907 = vmatprep.subr.bf16.mxu1 %v3837_v46  ;;  %v1015_v44 = vpop.permute.xlu0 %1014  ;;  %v1021_v45 = vpop.permute.xlu1 %1020 }
 0x120   : >> { %865 = vmatpush1.bf16.msra.mxu0 %v3840_v47  ;;  %908 = vmatpush1.bf16.msra.mxu1 %v3846_v48 }
 0x121   : >> { %866 = vmatprep.subr.bf16.mxu0 %v3652_v4  ;;  %909 = vmatprep.subr.bf16.mxu1 %v3667_v7  ;;  %v847_v4 = vsel %vm509_vm2, %v842_v36, %v844_v42  ;;  %v1032_v7 = vpop.permute.xlu0 %1031 }
 0x124   : >> { %867 = vmatpush1.bf16.msra.mxu0 %v3662_v6  ;;  %910 = vmatpush1.bf16.msra.mxu1 %v3657_v5  ;;  %v1022_v6 = vsel %vm493_vm1, %v1015_v44, %v1017_v43  ;;  %v1024_v5 = vsel %vm493_vm1, %v1019_v37, %v1021_v45 }
 0x125   : >> { %882 = vmatprep.subr.bf16.mxu0 %v846_v39  ;;  %925 = vmatprep.subr.bf16.mxu1 %v844_v42 }
 0x128   : >> { %883 = vmatpush2.bf16.msra.mxu0 %v845_v41  ;;  %926 = vmatpush2.bf16.msra.mxu1 %v847_v4 }
 0x129   : >> { %1044 = vmatprep.subr.bf16.mxu0 %v1023_v40  ;;  %1087 = vmatprep.subr.bf16.mxu1 %v1021_v45 }
 0x12b   : >> { %885 = vmatmul.mubr.bf16.vlgmr.msra.gmra.mxu0 %v3872_v8  ;;  %928 = vmatmul.mubr.bf16.vlgmr.msra.gmra.mxu1 %v3872_v8 }
 0x12c   : >> { %1045 = vmatpush1.bf16.msra.mxu0 %v1022_v6  ;;  %1088 = vmatpush1.bf16.msra.mxu1 %v1024_v5 }
 0x12d   : >> { %1046 = vmatprep.subr.bf16.mxu0 %v3750_v17  ;;  %1089 = vmatprep.subr.bf16.mxu1 %v3765_v20 }
 0x12e   : >> { %2768 = vmatprep.mubr.msk.bf16.mxu0 %vm640_vm0, %v3705_v12  ;;  %2769 = vmatprep.mubr.msk.bf16.mxu1 %vm640_vm0, %v3705_v12  ;;  %v1034_v12 = vpop.permute.xlu1 %1033 }
 0x130   : >> { %1047 = vmatpush1.bf16.msra.mxu0 %v3760_v19  ;;  %1090 = vmatpush1.bf16.msra.mxu1 %v3755_v18 }
 0x131   : >> { %1048 = vmatprep.subr.bf16.mxu0 %v846_v39  ;;  %1091 = vmatprep.subr.bf16.mxu1 %v844_v42 }
 0x134   : >> { %1049 = vmatpush1.bf16.msra.mxu0 %v845_v41  ;;  %1092 = vmatpush1.bf16.msra.mxu1 %v847_v4 }
 0x135   : >> { %1050 = vmatprep.subr.bf16.mxu0 %v3884_v26  ;;  %1093 = vmatprep.subr.bf16.mxu1 %v3891_v28 }
 0x138   : >> { %1051 = vmatpush1.bf16.msra.mxu0 %v3894_v29  ;;  %1094 = vmatpush1.bf16.msra.mxu1 %v3900_v30 }
 0x139   : >> { %1052 = vmatprep.subr.bf16.mxu0 %v3722_v13  ;;  %1095 = vmatprep.subr.bf16.mxu1 %v3737_v16  ;;  %v1038_v13 = vsel %vm509_vm2, %v1032_v7, %v1034_v12 }
 0x13c   : >> { %1053 = vmatpush1.bf16.msra.mxu0 %v3732_v15  ;;  %1096 = vmatpush1.bf16.msra.mxu1 %v3727_v14  ;;  %v1030_v14 = vpop.permute.xlu0 %1029  ;;  %v1036_v15 = vpop.permute.xlu1 %1035 }
 0x13d   : >> { %1054 = vmatprep.subr.bf16.mxu0 %v3863_v22  ;;  %1097 = vmatprep.subr.bf16.mxu1 %v3867_v24  ;;  %v1037_v16 = vsel %vm509_vm2, %v1030_v14, %v1032_v7  ;;  %v1039_v17 = vsel %vm509_vm2, %v1034_v12, %v1036_v15 }
 0x140   : >> { %1055 = vmatpush1.bf16.msra.mxu0 %v3870_v25  ;;  %1098 = vmatpush1.bf16.msra.mxu1 %v3878_v10  ;;  %v3972_v20 = vpop.permute.xlu0 %623 }
 0x141   : >> { %1056 = vmatprep.subr.bf16.mxu0 %v3800_v32  ;;  %1099 = vmatprep.subr.bf16.mxu1 %v3797_v31 }
 0x144   : >> { %1057 = vmatpush1.bf16.msra.mxu0 %v3809_v34  ;;  %1100 = vmatpush1.bf16.msra.mxu1 %v3806_v33  ;;  %v3975_v33 = vpop.permute.xlu1 %628  ;;  %v4007_v6 = vpop.permute.xlu0 %763 }
 0x145   : >> { %1058 = vmatprep.subr.bf16.mxu0 %v3634_v0  ;;  %1101 = vmatprep.subr.bf16.mxu1 %v3647_v3 }
 0x148   : >> { %1059 = vmatpush1.bf16.msra.mxu0 %v3637_v1  ;;  %1102 = vmatpush1.bf16.msra.mxu1 %v3642_v2  ;;  %v3979_v53 = vpop.permute.xlu1 %758 }
 0x149   : >> { %1074 = vmatprep.subr.bf16.mxu0 %v1038_v13  ;;  %1117 = vmatprep.subr.bf16.mxu1 %v1036_v15 }
 0x14c   : >> { %1075 = vmatpush2.bf16.msra.mxu0 %v1037_v16  ;;  %1118 = vmatpush2.bf16.msra.mxu1 %v1039_v17  ;;  %v3992_v11 = vpop.permute.xlu1 %778 }
 0x14f   : >> { %1077 = vmatmul.mubr.bf16.vlgmr.msra.gmra.mxu0 %v3872_v8  ;;  %1120 = vmatmul.mubr.bf16.vlgmr.msra.gmra.mxu1 %v3872_v8 }
 0x1c3   : >> { %v678_v0 = vpop.f32.mrf.mxu0  ;;  %v721_v3 = vpop.f32.mrf.mxu1 }
 0x1c4   : >> { %v679_v32 = vadd.f32 %v678_v0, %v3972_v20  ;;  %v722_v46 = vadd.f32 %v721_v3, %v3972_v20 }
 0x1c5   : >> { %v680_v18 = vpop.f32.mrf.mxu0  ;;  %v723_v19 = vpop.f32.mrf.mxu1 }
 0x1c6   : >> { %v738_v48 = vmul.f32 0.1, %v679_v32  ;;  %vm730_vm3 = vcmp.gt.f32.partialorder %v679_v32, 0.0  ;;  %v740_v50 = vmul.f32 0.1, %v722_v46  ;;  %vm732_vm4 = vcmp.gt.f32.partialorder %v722_v46, 0.0 }
 0x1c7   : >> { %v682_v1 = vpop.f32.mrf.mxu0  ;;  %v725_v2 = vpop.f32.mrf.mxu1  ;;  %v681_v52 = vadd.f32 %v680_v18, %v3972_v20  ;;  %v724_v54 = vadd.f32 %v723_v19, %v3972_v20 }
 0x1c8   : >> { %v683_v55 = vadd.f32 %v682_v1, %v3975_v33  ;;  %v726_v56 = vadd.f32 %v725_v2, %v3975_v33  ;;  %v746_v57 = vsel %vm730_vm3, %v679_v32, %v738_v48  ;;  %v748_v60 = vsel %vm732_vm4, %v722_v46, %v740_v50 }
 0x1c9   : >> { %v684_v31 = vpop.f32.mrf.mxu0  ;;  %v727_v47 = vpop.f32.mrf.mxu1  ;;  %vm731_vm5 = vcmp.gt.f32.partialorder %v681_v52, 0.0  ;;  %v3988_v21 = vmul.f32 %v3979_v53, %v746_v57  ;;  %v739_v22 = vmul.f32 0.1, %v681_v52  ;;  %vm733_vm6 = vcmp.gt.f32.partialorder %v724_v54, 0.0 }
 0x1ca   : >> { %v685_v59 = vadd.f32 %v684_v31, %v3975_v33  ;;  %v728_v63 = vadd.f32 %v727_v47, %v3975_v33  ;;  %vm734_vm7 = vcmp.gt.f32.partialorder %v683_v55, 0.0  ;;  %v742_v24 = vmul.f32 0.1, %v683_v55  ;;  %v4017_v47 = vpop.permute.xlu0 %783 }
 0x1cb   : >> { %v744_v25 = vmul.f32 0.1, %v726_v56  ;;  %v768_v8 = vmul.f32 %v3979_v53, %v748_v60  ;;  %vm736_vm8 = vcmp.gt.f32.partialorder %v726_v56, 0.0  ;;  %v747_v30 = vsel %vm731_vm5, %v681_v52, %v739_v22 }
 0x1cc   : >> { %vm735_vm9 = vcmp.gt.f32.partialorder %v685_v59, 0.0  ;;  %v743_v9 = vmul.f32 0.1, %v685_v59  ;;  %vm737_vm10 = vcmp.gt.f32.partialorder %v728_v63, 0.0  ;;  %v745_v28 = vmul.f32 0.1, %v728_v63 }
 0x1cd   : >> { %v750_v42 = vsel %vm734_vm7, %v683_v55, %v742_v24  ;;  %v4000_v43 = vadd.f32 %v3992_v11, %v768_v8  ;;  %v752_v39 = vsel %vm736_vm8, %v726_v56, %v744_v25  ;;  %v741_v44 = vmul.f32 0.1, %v724_v54 }
 0x1ce   : >> { %v753_v4 = vsel %vm737_vm10, %v728_v63, %v745_v28  ;;  %v751_v45 = vsel %vm735_vm9, %v685_v59, %v743_v9  ;;  %v767_v5 = vmul.f32 %v3979_v53, %v747_v30  ;;  %v770_v2 = vmul.f32 %v4007_v6, %v750_v42 }
 0x1cf   : >> { %v749_v3 = vsel %vm733_vm6, %v724_v54, %v741_v44  ;;  %v772_v32 = vmul.f32 %v4007_v6, %v752_v39  ;;  %v771_v46 = vmul.f32 %v4007_v6, %v751_v45 }
 0x1d0   : >> { %v4025_v54 = vadd.f32 %v3992_v11, %v767_v5  ;;  %v4034_v60 = vadd.f32 %v4017_v47, %v770_v2 }
 0x1eb   : >> { %v886_v34 = vpop.f32.mrf.mxu0  ;;  %v929_v49 = vpop.f32.mrf.mxu1 }
 0x1ec   : >> { %v930_v61 = vadd.f32 %v929_v49, %v3972_v20  ;;  %v887_v40 = vadd.f32 %v886_v34, %v3972_v20  ;;  %v769_v49 = vmul.f32 %v3979_v53, %v749_v3 }
 0x1ed   : >> { %v888_v51 = vpop.f32.mrf.mxu0  ;;  %v931_v58 = vpop.f32.mrf.mxu1 }
 0x1ee   : >> { %v889_v23 = vadd.f32 %v888_v51, %v3972_v20  ;;  %v948_v26 = vmul.f32 0.1, %v930_v61  ;;  %vm940_vm11 = vcmp.gt.f32.partialorder %v930_v61, 0.0  ;;  %v932_v29 = vadd.f32 %v931_v58, %v3972_v20 }
 0x1ef   : >> { %v890_v62 = vpop.f32.mrf.mxu0  ;;  %v933_v10 = vpop.f32.mrf.mxu1  ;;  %v946_v0 = vmul.f32 0.1, %v887_v40  ;;  %vm938_vm4 = vcmp.gt.f32.partialorder %v887_v40, 0.0  ;;  %v773_v51 = vmul.f32 %v4007_v6, %v753_v4  ;;  %v4049_v25 = vadd.f32 %v3992_v11, %v769_v49 }
 0x1f0   : >> { %v947_v35 = vmul.f32 0.1, %v889_v23  ;;  %v891_v36 = vadd.f32 %v890_v62, %v3975_v33  ;;  %v934_v38 = vadd.f32 %v933_v10, %v3975_v33  ;;  %vm939_vm12 = vcmp.gt.f32.partialorder %v889_v23, 0.0 }
 0x1f1   : >> { %v892_v27 = vpop.f32.mrf.mxu0  ;;  %v956_v41 = vsel %vm940_vm11, %v930_v61, %v948_v26  ;;  %v949_v7 = vmul.f32 0.1, %v932_v29  ;;  %v935_v12 = vpop.f32.mrf.mxu1  ;;  %vm941_vm13 = vcmp.gt.f32.partialorder %v932_v29, 0.0  ;;  %v954_v52 = vsel %vm938_vm4, %v887_v40, %v946_v0 }
 0x1f2   : >> { %v893_v37 = vadd.f32 %v892_v27, %v3975_v33  ;;  %v955_v13 = vsel %vm939_vm12, %v889_v23, %v947_v35  ;;  %v950_v14 = vmul.f32 0.1, %v891_v36  ;;  %v952_v15 = vmul.f32 0.1, %v934_v38 }
 0x1f3   : >> { %v964_v16 = vmul.f32 %v956_v41, %v3979_v53  ;;  %vm942_vm14 = vcmp.gt.f32.partialorder %v891_v36, 0.0  ;;  %vm944_vm15 = vcmp.gt.f32.partialorder %v934_v38, 0.0  ;;  %v936_v18 = vadd.f32 %v935_v12, %v3975_v33 }
 0x1f4   : >> { %v951_v17 = vmul.f32 0.1, %v893_v37  ;;  %vm943_vm3 = vcmp.gt.f32.partialorder %v893_v37, 0.0  ;;  %v963_v19 = vmul.f32 %v955_v13, %v3979_v53  ;;  %v957_v1 = vsel %vm941_vm13, %v932_v29, %v949_v7 }
 0x1f5   : >> { %v958_v31 = vsel %vm942_vm14, %v891_v36, %v950_v14  ;;  %v960_v34 = vsel %vm944_vm15, %v934_v38, %v952_v15  ;;  %v4020_v48 = vadd.f32 %v964_v16, %v3992_v11  ;;  %v965_v55 = vmul.f32 %v957_v1, %v3979_v53 }
 0x1f6   : >> { %v959_v50 = vsel %vm943_vm3, %v893_v37, %v951_v17  ;;  %v953_v56 = vmul.f32 0.1, %v936_v18  ;;  %v4029_v57 = vadd.f32 %v963_v19, %v3992_v11  ;;  %v966_v58 = vmul.f32 %v958_v31, %v4007_v6 }
 0x1f7   : >> { %v968_v59 = vmul.f32 %v960_v34, %v4007_v6  ;;  %vm945_vm5 = vcmp.gt.f32.partialorder %v936_v18, 0.0  ;;  %v4037_v61 = vadd.f32 %v4017_v47, %v772_v32  ;;  %v4040_v62 = vadd.f32 %v4017_v47, %v771_v46 }
 0x1f8   : >> { %v967_v63 = vmul.f32 %v959_v50, %v4007_v6  ;;  %v4044_v23 = vmul.f32 %v954_v52, %v3979_v53  ;;  %v980_v24 = vmax.f32 %v4000_v43, %v4020_v48  ;;  %v4052_v8 = vadd.f32 %v4017_v47, %v773_v51 }
 0x1f9   : >> { %v4055_v9 = vadd.f32 %v965_v55, %v3992_v11  ;;  %v961_v26 = vsel %vm945_vm5, %v936_v18, %v953_v56  ;;  %v979_v30 = vmax.f32 %v4025_v54, %v4029_v57  ;;  %v4062_v35 = vadd.f32 %v966_v58, %v4017_v47 }
 0x1fa   : >> { %v4065_v36 = vadd.f32 %v968_v59, %v4017_v47  ;;  %v4069_v43 = vadd.f32 %v967_v63, %v4017_v47  ;;  %v969_v41 = vmul.f32 %v961_v26, %v4007_v6  ;;  %vm1633_vm14 = vcmask 1043456  }
 0x1fb   : >> { %vm1629_vm15 = vcmask 719872   ;;  %vm1741_vm3 = vcmask 244740  }
 0x1fc   : >> { %v977_v18 = vadd.f32 %v969_v41, %v4017_v47  ;;  %v3087_v41 = vld [vmem:[%s4780_s5 + $0x174] ss:$8 sps:$4 sm:$0xff]   ;;  %vm1742_vm4 = vmor %vm1741_vm3, %vm1633_vm14 }
 0x1fd   : >> { %1683 = vmatprep.subr.bf16.mxu1 %v3087_v41 }
 0x20f   : >> { %v1078_v22 = vpop.f32.mrf.mxu0  ;;  %v1121_v10 = vpop.f32.mrf.mxu1 }
 0x210   : >> { %v1079_v27 = vadd.f32 %v1078_v22, %v3972_v20  ;;  %v1122_v28 = vadd.f32 %v1121_v10, %v3972_v20  ;;  %v970_v22 = vadd.f32 %v4044_v23, %v3992_v11  ;;  %v983_v10 = vmax.f32 %v4040_v62, %v4069_v43 }
 0x211   : >> { %v1080_v29 = vpop.f32.mrf.mxu0  ;;  %v1123_v42 = vpop.f32.mrf.mxu1  ;;  %v786_v23 = vadd.f32 %v3992_v11, %v3988_v21  ;;  %v984_v62 = vmax.f32 %v4037_v61, %v4065_v36  ;;  %v3081_v36 = vld [vmem:[%s4780_s5 + $0x64] ss:$8 sps:$4 sm:$0xff]  }
 0x212   : >> { %v1081_v38 = vadd.f32 %v1080_v29, %v3972_v20  ;;  %vm1132_vm6 = vcmp.gt.f32.partialorder %v1122_v28, 0.0  ;;  %v1140_v37 = vmul.f32 0.1, %v1122_v28  ;;  %v1124_v39 = vadd.f32 %v1123_v42, %v3972_v20 }
 0x213   : >> { %v1082_v40 = vpop.f32.mrf.mxu0  ;;  %v1125_v45 = vpop.f32.mrf.mxu1  ;;  %v1138_v5 = vmul.f32 0.1, %v1079_v27  ;;  %vm1130_vm10 = vcmp.gt.f32.partialorder %v1079_v27, 0.0  ;;  %v978_v43 = vmax.f32 %v786_v23, %v970_v22  ;;  %v3124_v22 = vld [vmem:[%s4780_s5 + $0xe0] ss:$8 sps:$4 sm:$0xff]  }
 0x214   : >> { %vm1131_vm7 = vcmp.gt.f32.partialorder %v1081_v38, 0.0  ;;  %v1139_v44 = vmul.f32 0.1, %v1081_v38  ;;  %v1083_v4 = vadd.f32 %v1082_v40, %v3975_v33  ;;  %v1148_v7 = vsel %vm1132_vm6, %v1122_v28, %v1140_v37  ;;  %v3085_v40 = vld [vmem:[%s4780_s5 + $0x170] ss:$8 sps:$4 sm:$0xff]  }
 0x215   : >> { %vm1133_vm8 = vcmp.gt.f32.partialorder %v1124_v39, 0.0  ;;  %v1141_v12 = vmul.f32 0.1, %v1124_v39  ;;  %v1084_v13 = vpop.f32.mrf.mxu0  ;;  %v1156_v14 = vmul.f32 %v1148_v7, %v3979_v53  ;;  %v1126_v0 = vadd.f32 %v1125_v45, %v3975_v33  ;;  %v1127_v3 = vpop.f32.mrf.mxu1  ;;  %v3084_v45 = vld [vmem:[%s4780_s5 + $0x54] ss:$8 sps:$4 sm:$0xff]   ;;  %1684 = vmatpush1.bf16.msra.mxu1 %v3085_v40 }
 0x216   : >> { %v1147_v15 = vsel %vm1131_vm7, %v1081_v38, %v1139_v44  ;;  %vm1134_vm9 = vcmp.gt.f32.partialorder %v1083_v4, 0.0  ;;  %v1142_v16 = vmul.f32 0.1, %v1083_v4  ;;  %v1085_v2 = vadd.f32 %v1084_v13, %v3975_v33  ;;  %v3079_v44 = vld [vmem:[%s4780_s5 + $0x60] ss:$8 sps:$4 sm:$0xff]  }
 0x217   : >> { %v1155_v20 = vmul.f32 %v1147_v15, %v3979_v53  ;;  %v1149_v17 = vsel %vm1133_vm8, %v1124_v39, %v1141_v12  ;;  %v1164_v19 = vadd.f32 %v1156_v14, %v3992_v11  ;;  %vm1136_vm11 = vcmp.gt.f32.partialorder %v1126_v0, 0.0  ;;  %v3082_v7 = vld [vmem:[%s4780_s5 + $0x50] ss:$8 sps:$4 sm:$0xff]   ;;  %v3099_v12 = vld [vmem:[%s4780_s5 + $0x154] ss:$8 sps:$4 sm:$0xff]  }
 0x218   : >> { %v1150_v1 = vsel %vm1134_vm9, %v1083_v4, %v1142_v16  ;;  %v1157_v32 = vmul.f32 %v1149_v17, %v3979_v53  ;;  %v1144_v34 = vmul.f32 0.1, %v1126_v0  ;;  %v1146_v46 = vsel %vm1130_vm10, %v1079_v27, %v1138_v5  ;;  %v3093_v4 = vld [vmem:[%s4780_s5 + $0x164] ss:$8 sps:$4 sm:$0xff]   ;;  %v3091_v5 = vld [vmem:[%s4780_s5 + $0x160] ss:$8 sps:$4 sm:$0xff]  }
 0x219   : >> { %v1163_v31 = vadd.f32 %v1155_v20, %v3992_v11  ;;  %vm1135_vm12 = vcmp.gt.f32.partialorder %v1085_v2, 0.0  ;;  %v1143_v48 = vmul.f32 0.1, %v1085_v2  ;;  %v1128_v49 = vadd.f32 %v1127_v3, %v3975_v33  ;;  %1685 = vmatprep.subr.bf16.mxu1 %v3093_v4  ;;  %v3090_v13 = vld [vmem:[%s4780_s5 + $0x44] ss:$8 sps:$4 sm:$0xff]  }
 0x21a   : >> { %v1158_v50 = vmul.f32 %v1150_v1, %v4007_v6  ;;  %v1152_v51 = vsel %vm1136_vm11, %v1126_v0, %v1144_v34  ;;  %v4086_v54 = vmax.f32 %v980_v24, %v1164_v19  ;;  %v1154_v58 = vmul.f32 %v1146_v46, %v3979_v53  ;;  %1686 = vmatpush1.bf16.msra.mxu1 %v3091_v5  ;;  %v3097_v14 = vld [vmem:[%s4780_s5 + $0x150] ss:$8 sps:$4 sm:$0xff]   ;;  %v3088_v15 = vld [vmem:[%s4780_s5 + $0x40] ss:$8 sps:$4 sm:$0xff]   ;;  %v3105_v16 = vld [vmem:[%s4780_s5 + $0x144] ss:$8 sps:$4 sm:$0xff]  }
 0x21b   : >> { %v4084_v52 = vmax.f32 %v979_v30, %v1163_v31  ;;  %v1160_v55 = vmul.f32 %v1152_v51, %v4007_v6  ;;  %v1151_v56 = vsel %vm1135_vm12, %v1085_v2, %v1143_v48  ;;  %vm1137_vm13 = vcmp.gt.f32.partialorder %v1128_v49, 0.0  ;;  %1687 = vmatprep.subr.bf16.mxu1 %v3099_v12  ;;  %v3096_v20 = vld [vmem:[%s4780_s5 + $0x34] ss:$8 sps:$4 sm:$0xff]   ;;  %v3103_v17 = vld [vmem:[%s4780_s5 + $0x140] ss:$8 sps:$4 sm:$0xff]  }
 0x21c   : >> { %v1145_v57 = vmul.f32 0.1, %v1128_v49  ;;  %v1165_v59 = vadd.f32 %v1157_v32, %v3992_v11  ;;  %v1159_v63 = vmul.f32 %v1151_v56, %v4007_v6  ;;  %v981_v24 = vmax.f32 %v4049_v25, %v4055_v9  ;;  %v3094_v0 = vld [vmem:[%s4780_s5 + $0x30] ss:$8 sps:$4 sm:$0xff]   ;;  %v3111_v3 = vld [vmem:[%s4780_s5 + $0x134] ss:$8 sps:$4 sm:$0xff]  }
 0x21d   : >> { %v3003_v33 = vpack.i.bf16 %v4086_v54, %v4084_v52  ;;  %v1166_v27 = vadd.f32 %v1158_v50, %v4017_v47  ;;  %v1168_v53 = vadd.f32 %v1160_v55, %v4017_v47  ;;  %v982_v25 = vmax.f32 %v4034_v60, %v4062_v35  ;;  %v3109_v19 = vld [vmem:[%s4780_s5 + $0x130] ss:$8 sps:$4 sm:$0xff]   ;;  %v3100_v1 = vld [vmem:[%s4780_s5 + $0x20] ss:$8 sps:$4 sm:$0xff]   ;;  %v3117_v2 = vld [vmem:[%s4780_s5 + $0x124] ss:$8 sps:$4 sm:$0xff]  }
 0x21e   : >> { %v1153_v26 = vsel %vm1137_vm13, %v1128_v49, %v1145_v57  ;;  %v1167_v28 = vadd.f32 %v1159_v63, %v4017_v47  ;;  %v985_v9 = vmax.f32 %v4052_v8, %v977_v18  ;;  %v1162_v30 = vadd.f32 %v1154_v58, %v3992_v11  ;;  %v3078_v8 = vld [vmem:[%s4780_s5 + $0x74] ss:$8 sps:$4 sm:$0xff]   ;;  %1688 = vmatpush1.bf16.msra.mxu1 %v3097_v14  ;;  %v3102_v18 = vld [vmem:[%s4780_s5 + $0x24] ss:$8 sps:$4 sm:$0xff]   ;;  %v3115_v32 = vld [vmem:[%s4780_s5 + $0x120] ss:$8 sps:$4 sm:$0xff]  }
 0x21f   : >> { %v1161_v29 = vmul.f32 %v1153_v26, %v4007_v6  ;;  %3004 = vrot.lane.b32.xlu1 %v3003_v33, %s3411_s12  ;;  %v4114_v42 = vmax.f32 %v981_v24, %v1165_v59  ;;  %v4118_v37 = vmax.f32 %v984_v62, %v1168_v53  ;;  %v4124_v35 = vmax.f32 %v982_v25, %v1166_v27  ;;  %v3108_v31 = vld [vmem:[%s4780_s5 + $0x14] ss:$8 sps:$4 sm:$0xff]   ;;  %v3106_v34 = vld [vmem:[%s4780_s5 + $0x10] ss:$8 sps:$4 sm:$0xff]   ;;  %v3114_v48 = vld [vmem:[%s4780_s5 + $0x4] ss:$8 sps:$4 sm:$0xff]  }
 0x220   : >> { %v4116_v6 = vmax.f32 %v983_v10, %v1167_v28  ;;  %v4129_v11 = vmax.f32 %v978_v43, %v1162_v30  ;;  %1640 = vmatprep.subr.bf16.mxu0 %v3078_v8  ;;  %1689 = vmatprep.subr.bf16.mxu1 %v3105_v16  ;;  %v3123_v46 = vld [vmem:[%s4780_s5 + $0x114] ss:$8 sps:$4 sm:$0xff]   ;;  %v3121_v49 = vld [vmem:[%s4780_s5 + $0x110] ss:$8 sps:$4 sm:$0xff]   ;;  %v3112_v50 = vld [vmem:[%s4780_s5] ss:$8 sps:$4 sm:$0xff]  }
 0x221   : >> { %v1169_v38 = vadd.f32 %v1161_v29, %v4017_v47  ;;  %v3076_v47 = vld [vmem:[%s4780_s5 + $0x70] ss:$8 sps:$4 sm:$0xff]   ;;  %v3129_v51 = vld [vmem:[%s4780_s5 + $0x104] ss:$8 sps:$4 sm:$0xff]   ;;  %v3120_v55 = vld [vmem:[%s4780_s5 + $0xf4] ss:$8 sps:$4 sm:$0xff]  }
 0x222   : >> { %v3013_v60 = vpack.i.bf16 %v4116_v6, %v4114_v42  ;;  %v3018_v39 = vpack.i.bf16 %v4124_v35, %v4129_v11  ;;  %1641 = vmatpush1.bf16.msra.mxu0 %v3076_v47  ;;  %1690 = vmatpush1.bf16.msra.mxu1 %v3103_v17  ;;  %v1333_v56 = vld [vmem:[%s4780_s5 + $0x1d0] sm:$0xff]  ;;  %v3127_v57 = vld [vmem:[%s4780_s5 + $0x100] ss:$8 sps:$4 sm:$0xff]   ;;  %v3126_v33 = vld [vmem:[%s4780_s5 + $0xe4] ss:$8 sps:$4 sm:$0xff]  }
 0x223   : >> { %v4120_v21 = vmax.f32 %v985_v9, %v1169_v38  ;;  %1642 = vmatprep.subr.bf16.mxu0 %v3081_v36  ;;  %1691 = vmatprep.subr.bf16.mxu1 %v3111_v3  ;;  %v3118_v58 = vld [vmem:[%s4780_s5 + $0xf0] ss:$8 sps:$4 sm:$0xff]   ;;  %v2829_v59 = vcombine.high %v1333_v56, %v1333_v56  ;;  %v2828_v63 = vcombine.low %v1333_v56, %v1333_v56  ;;  %v3140_v10 = vld [vmem:[%s4780_s5 + $0x1c4] ss:$8 sps:$4 sm:$0xff]   ;;  %v3132_v26 = vld [vmem:[%s4780_s5 + $0xd4] ss:$8 sps:$4 sm:$0xff]  }
 0x224   : >> { %3014 = vrot.lane.b32.xlu0 %v3013_v60, %s3411_s12  ;;  %v3138_v27 = vld [vmem:[%s4780_s5 + $0x1c0] ss:$8 sps:$4 sm:$0xff]   ;;  %v3130_v53 = vld [vmem:[%s4780_s5 + $0xd0] ss:$8 sps:$4 sm:$0xff]   ;;  %v3146_v28 = vld [vmem:[%s4780_s5 + $0x1b4] ss:$8 sps:$4 sm:$0xff]  }
 0x225   : >> { %v3008_v61 = vpack.i.bf16 %v4120_v21, %v4118_v37  ;;  %v1635_v24 = vsel %vm1633_vm14, %v2828_v63, 0  ;;  %v3137_v29 = vld [vmem:[%s4780_s5 + $0xc4] ss:$8 sps:$4 sm:$0xff]   ;;  %v3144_v23 = vld [vmem:[%s4780_s5 + $0x1b0] ss:$8 sps:$4 sm:$0xff]  }
 0x226   : >> { %1643 = vmatpush1.bf16.msra.mxu0 %v3079_v44  ;;  %1692 = vmatpush1.bf16.msra.mxu1 %v3109_v19  ;;  %v3135_v25 = vld [vmem:[%s4780_s5 + $0xc0] ss:$8 sps:$4 sm:$0xff]   ;;  %v3152_v62 = vld [vmem:[%s4780_s5 + $0x1a4] ss:$8 sps:$4 sm:$0xff]   ;;  %v3143_v9 = vld [vmem:[%s4780_s5 + $0xb4] ss:$8 sps:$4 sm:$0xff]  }
 0x227   : >> { %3009 = vrot.lane.b32.xlu1 %v3008_v61, %s3411_s12  ;;  %1644 = vmatprep.subr.bf16.mxu0 %v3084_v45  ;;  %v3150_v30 = vld [vmem:[%s4780_s5 + $0x1a0] ss:$8 sps:$4 sm:$0xff]   ;;  %v3141_v38 = vld [vmem:[%s4780_s5 + $0xb0] ss:$8 sps:$4 sm:$0xff]   ;;  %v3149_v43 = vld [vmem:[%s4780_s5 + $0xa4] ss:$8 sps:$4 sm:$0xff]  }
 0x228   : >> { %3019 = vrot.lane.b32.xlu0 %v3018_v39, %s3411_s12  ;;  %1693 = vmatprep.subr.bf16.mxu1 %v3117_v2  ;;  %v3147_v60 = vld [vmem:[%s4780_s5 + $0xa0] ss:$8 sps:$4 sm:$0xff]   ;;  %v3153_v36 = vld [vmem:[%s4780_s5 + $0x90] ss:$8 sps:$4 sm:$0xff]   ;;  %v3155_v39 = vld [vmem:[%s4780_s5 + $0x94] ss:$8 sps:$4 sm:$0xff]  }
 0x229   : >> { %v3156_v40 = vld [vmem:[%s4780_s5 + $0x190] ss:$8 sps:$4 sm:$0xff]   ;;  %v3158_v44 = vld [vmem:[%s4780_s5 + $0x194] ss:$8 sps:$4 sm:$0xff]   ;;  %v3161_v17 = vld [vmem:[%s4780_s5 + $0x84] ss:$8 sps:$4 sm:$0xff]  }
 0x22a   : >> { %1645 = vmatpush1.bf16.msra.mxu0 %v3082_v7  ;;  %1694 = vmatpush1.bf16.msra.mxu1 %v3115_v32  ;;  %v3162_v2 = vld [vmem:[%s4780_s5 + $0x180] ss:$8 sps:$4 sm:$0xff]  }
 0x22b   : >> { %1646 = vmatprep.subr.bf16.mxu0 %v3090_v13  ;;  %1695 = vmatprep.subr.bf16.mxu1 %v3123_v46 }
 0x22e   : >> { %1647 = vmatpush1.bf16.msra.mxu0 %v3088_v15  ;;  %1696 = vmatpush1.bf16.msra.mxu1 %v3121_v49 }
 0x22f   : >> { %1648 = vmatprep.subr.bf16.mxu0 %v3096_v20  ;;  %1697 = vmatprep.subr.bf16.mxu1 %v3129_v51 }
 0x232   : >> { %1649 = vmatpush1.bf16.msra.mxu0 %v3094_v0  ;;  %1698 = vmatpush1.bf16.msra.mxu1 %v3127_v57  ;;  %v3164_v0 = vld [vmem:[%s4780_s5 + $0x184] ss:$8 sps:$4 sm:$0xff]  }
 0x233   : >> { %1650 = vmatprep.subr.bf16.mxu0 %v3102_v18  ;;  %2830 = vmatprep.subr.msk.bf16.mxu1 %vm1633_vm14, %v2829_v59 }
 0x236   : >> { %1651 = vmatpush1.bf16.msra.mxu0 %v3100_v1  ;;  %1704 = vmatpush2.bf16.msra.mxu1 %v1635_v24  ;;  %v3159_v1 = vld [vmem:[%s4780_s5 + $0x80] ss:$8 sps:$4 sm:$0xff]  }
 0x237   : >> { %1652 = vmatprep.subr.bf16.mxu0 %v3108_v31  ;;  %1705 = vmatprep.subr.bf16.mxu1 %v3140_v10 }
 0x23a   : >> { %1653 = vmatpush1.bf16.msra.mxu0 %v3106_v34  ;;  %1706 = vmatpush2.bf16.msra.mxu1 %v3138_v27 }
 0x23b   : >> { %1654 = vmatprep.subr.bf16.mxu0 %v3114_v48  ;;  %1707 = vmatprep.subr.bf16.mxu1 %v3146_v28 }
 0x23e   : >> { %1655 = vmatpush1.bf16.msra.mxu0 %v3112_v50  ;;  %1708 = vmatpush2.bf16.msra.mxu1 %v3144_v23 }
 0x23f   : >> { %1656 = vmatprep.subr.bf16.mxu0 %v3120_v55  ;;  %1709 = vmatprep.subr.bf16.mxu1 %v3152_v62 }
 0x242   : >> { %1657 = vmatpush2.bf16.msra.mxu0 %v3118_v58  ;;  %1710 = vmatpush2.bf16.msra.mxu1 %v3150_v30 }
 0x243   : >> { %1658 = vmatprep.subr.bf16.mxu0 %v3126_v33  ;;  %1711 = vmatprep.subr.bf16.mxu1 %v3158_v44 }
 0x246   : >> { %1659 = vmatpush2.bf16.msra.mxu0 %v3124_v22  ;;  %1712 = vmatpush2.bf16.msra.mxu1 %v3156_v40 }
 0x247   : >> { %1660 = vmatprep.subr.bf16.mxu0 %v3132_v26  ;;  %1713 = vmatprep.subr.bf16.mxu1 %v3164_v0 }
 0x24a   : >> { %1661 = vmatpush2.bf16.msra.mxu0 %v3130_v53  ;;  %1714 = vmatpush2.bf16.msra.mxu1 %v3162_v2 }
 0x24b   : >> { %1662 = vmatprep.subr.bf16.mxu0 %v3137_v29 }
 0x24e   : >> { %1663 = vmatpush2.bf16.msra.mxu0 %v3135_v25 }
 0x24f   : >> { %1664 = vmatprep.subr.bf16.mxu0 %v3143_v9 }
 0x252   : >> { %1665 = vmatpush2.bf16.msra.mxu0 %v3141_v38 }
 0x253   : >> { %1666 = vmatprep.subr.bf16.mxu0 %v3149_v43 }
 0x256   : >> { %1667 = vmatpush2.bf16.msra.mxu0 %v3147_v60 }
 0x257   : >> { %1668 = vmatprep.subr.bf16.mxu0 %v3155_v39 }
 0x25a   : >> { %1669 = vmatpush2.bf16.msra.mxu0 %v3153_v36 }
 0x25b   : >> { %1670 = vmatprep.subr.bf16.mxu0 %v3161_v17 }
 0x25e   : >> { %1671 = vmatpush2.bf16.msra.mxu0 %v3159_v1 }
 0x291   : >> { %v3005_v61 = vpop.permute.xlu1 %3004 }
 0x292   : >> { %v3007_v47 = vunpack.i.h.bf16 %v3005_v61  ;;  %v3006_v8 = vunpack.i.l.bf16 %v3005_v61 }
 0x294   : >> { %v1204_v4 = vsel %vm493_vm1, %v3006_v8, %v3007_v47 }
 0x295   : >> { %v1218_v16 = vmax.f32 %v4084_v52, %v1204_v4 }
 0x296   : >> { %v3015_v41 = vpop.permute.xlu0 %3014 }
 0x297   : >> { %v3017_v45 = vunpack.i.h.bf16 %v3015_v41  ;;  %v3016_v5 = vunpack.i.l.bf16 %v3015_v41 }
 0x299   : >> { %v3010_v7 = vpop.permute.xlu1 %3009  ;;  %v1205_v14 = vsel %vm493_vm1, %v3007_v47, %v3016_v5  ;;  %v1220_v56 = vmax.f32 %v4114_v42, %v3016_v5 }
 0x29a   : >> { %v3012_v12 = vunpack.i.h.bf16 %v3010_v7  ;;  %v3011_v13 = vunpack.i.l.bf16 %v3010_v7  ;;  %v3020_v15 = vpop.permute.xlu0 %3019  ;;  %v1219_v20 = vmax.f32 %v4086_v54, %v1205_v14 }
 0x29b   : >> { %v3022_v19 = vunpack.i.h.bf16 %v3020_v15  ;;  %v3021_v31 = vunpack.i.l.bf16 %v3020_v15 }
 0x29c   : >> { %v1208_v3 = vsel %vm493_vm1, %v3011_v13, %v3012_v12  ;;  %v1207_v18 = vsel %vm493_vm1, %v3017_v45, %v3011_v13  ;;  %v3023_v32 = vpack.i.bf16 %v1219_v20, %v1218_v16  ;;  %v1224_v49 = vmax.f32 %v4120_v21, %v3012_v12 }
 0x29d   : >> { %v1222_v34 = vmax.f32 %v4116_v6, %v1207_v18  ;;  %v1223_v46 = vmax.f32 %v4118_v37, %v1208_v3  ;;  %v1206_v48 = vsel %vm493_vm1, %v3022_v19, %v3017_v45  ;;  %v1203_v50 = vsel %vm493_vm1, %v3021_v31, %v3006_v8 }
 0x29e   : >> { %3024 = vrot.lane.b32.xlu1 %v3023_v32, %s3411_s12  ;;  %v1221_v55 = vmax.f32 %v4124_v35, %v1206_v48  ;;  %v1217_v57 = vmax.f32 %v4129_v11, %v1203_v50 }
 0x29f   : >> { %v3028_v51 = vpack.i.bf16 %v1223_v46, %v1222_v34 }
 0x2a0   : >> { %v3038_v58 = vpack.i.bf16 %v1224_v49, %v1221_v55  ;;  %v3033_v59 = vpack.i.bf16 %v1220_v56, %v1217_v57 }
 0x2a1   : >> { %3029 = vrot.lane.b32.xlu0 %v3028_v51, %s3411_s12 }
 0x2a2   : >> { %3034 = vrot.lane.b32.xlu1 %v3033_v59, %s3411_s12 }
 0x2a5   : >> { %3039 = vrot.lane.b32.xlu0 %v3038_v58, %s3411_s12  ;;  %s2894_s12 = sshll.u32 %s3398_s13, 4  ;;  %s440_s13 = sadd.s32 1, %s3398_s13  }
 0x2a6   : >> { %s1740_s26 = scalar_lea.vmem [#allocation2], %s2894_s12  ;;  %p437_p11 = scmp.ge.s32.totalorder %s440_s13, 158  }
 0x2a7   : > { %s4351_s19 = smov (%p437_p11), 0  }
 0x310   : >> { %v3025_v63 = vpop.permute.xlu1 %3024 }
 0x311   : >> { %v3027_v33 = vunpack.i.h.bf16 %v3025_v63  ;;  %v3026_v22 = vunpack.i.l.bf16 %v3025_v63 }
 0x313   : >> { %v3030_v24 = vpop.permute.xlu0 %3029  ;;  %v1250_v10 = vsel %vm493_vm1, %v3026_v22, %v3027_v33 }
 0x314   : >> { %v3032_v26 = vunpack.i.h.bf16 %v3030_v24  ;;  %v3031_v27 = vunpack.i.l.bf16 %v3030_v24  ;;  %v1264_v53 = vmax.f32 %v4084_v52, %v1250_v10  ;;  %v3035_v29 = vpop.permute.xlu1 %3034 }
 0x315   : >> { %v3037_v25 = vunpack.i.h.bf16 %v3035_v29  ;;  %v3036_v62 = vunpack.i.l.bf16 %v3035_v29 }
 0x316   : >> { %v1253_v28 = vsel %vm493_vm1, %v3031_v27, %v3032_v26 }
 0x317   : >> { %v3040_v23 = vpop.permute.xlu0 %3039  ;;  %v1268_v9 = vmax.f32 %v4116_v6, %v1253_v28  ;;  %v1251_v43 = vsel %vm493_vm1, %v3027_v33, %v3037_v25  ;;  %v1266_v60 = vmax.f32 %v4114_v42, %v3037_v25  ;;  %v1249_v61 = vsel %vm493_vm1, %v3036_v62, %v3026_v22 }
 0x318   : >> { %v3042_v30 = vunpack.i.h.bf16 %v3040_v23  ;;  %v3041_v38 = vunpack.i.l.bf16 %v3040_v23  ;;  %v1265_v39 = vmax.f32 %v4086_v54, %v1251_v43  ;;  %v1263_v41 = vmax.f32 %v4129_v11, %v1249_v61 }
 0x319   : >> { %v1272_v47 = vpack.c.bf16 %v1268_v9, %v1264_v53 }
 0x31a   : >> { %v1254_v8 = vsel %vm493_vm1, %v3032_v26, %v3042_v30  ;;  %v1270_v52 = vmax.f32 %v4120_v21, %v3042_v30  ;;  %v1252_v36 = vsel %vm493_vm1, %v3041_v38, %v3031_v27 }
 0x31b   : >> { %v1269_v6 = vmax.f32 %v4118_v37, %v1254_v8  ;;  %v1267_v40 = vmax.f32 %v4124_v35, %v1252_v36  ;;  %1672 = vmatprep.mubr.bf16.mxu0 %v1272_v47 }
 0x31c   : >> { %v1274_v42 = vpack.c.bf16 %v1270_v52, %v1266_v60 }
 0x31d   : >> { %v1271_v44 = vpack.c.bf16 %v1267_v40, %v1263_v41  ;;  %v1273_v4 = vpack.c.bf16 %v1269_v6, %v1265_v39 }
 0x31e   : >> { %2831 = vmatprep.mubr.msk.bf16.mxu1 %vm1629_vm15, %v1274_v42 }
 0x31f   : >> { %1673 = vmatmul.mubr.bf16.vlgmr.msra.gmra.mxu0 %v1271_v44  ;;  %1716 = vmatmul.mubr.bf16.vlgmr.msra.gmra.mxu1 %v1273_v4 }
 0x3df   : >> { %v1674_v21 = vpop.f32.mrf.mxu0  ;;  %v1717_v45 = vpop.f32.mrf.mxu1 }
 0x3e0   : >> { %v1718_v7 = vadd.f32 %v1717_v45, %v1674_v21 }
 0x3e1   : >> { %v1676_v5 = vpop.f32.mrf.mxu0  ;;  %v1719_v54 = vpop.f32.mrf.mxu1 }
 0x3e2   : >> { %v1720_v37 = vadd.f32 %v1719_v54, %v1676_v5 }
 0x3e3   : >> { %v1678_v35 = vpop.f32.mrf.mxu0  ;;  %v1721_v11 = vpop.f32.mrf.mxu1 }
 0x3e4   : >> { %v2892_v12 = vpack.c.bf16 %v1720_v37, %v1718_v7  ;;  %v1722_v15 = vadd.f32 %v1721_v11, %v1678_v35 }
 0x3e5   : >> { %v1680_v13 = vpop.f32.mrf.mxu0  ;;  %v1723_v14 = vpop.f32.mrf.mxu1 }
 0x3e6   : >> { %1743 = vst.msk [vmem:[%s1740_s26] sm:$0xff] %vm1742_vm4, %v2892_v12  ;;  %v1724_v16 = vadd.f32 %v1723_v14, %v1680_v13  ;;  %439 = sbr.rel (!%p437_p11) target bundleno = 92 (0x5c), region = 143 }
 0x3e8   : >> { %v2893_v20 = vpack.c.bf16 %v1724_v16, %v1722_v15 }
 0x3ea   : >> { %1744 = vst.msk [vmem:[%s1740_s26 + $0x8] sm:$0xff] %vm1742_vm4, %v2893_v20 }
 0x3eb LB: >> { %s2895_s27 = smul.u32 48, %s3402_s19  ;;  %s3414_s30 = smov 127   ;;  %v4399_v46 = vld [vmem:[#allocation8 + $0x4] ss:$8 sps:$4 sm:$0xff]   ;;  %v1848_v48 = vld [vmem:[%s4782_s7 + $0x8] sm:$0xff]  ;;  %v1847_v49 = vld [vmem:[%s4782_s7] sm:$0xff]  ;;  %s3402_s19 = sphi %s4351_s19, %s1750_s19  }
 0x3ec   : >> { %s3415_s1 = smov 126   ;;  %2854 = vmatprep.mubr.msk.bf16.mxu0 %vm640_vm0, %v4399_v46  ;;  %2861 = vmatprep.mubr.msk.bf16.mxu1 %vm640_vm0, %v4399_v46  ;;  %v3416_v50 = vmov 0   ;;  %v1973_v51 = vld [vmem:[%s4783_s8] sm:$0xff]  ;;  %v1974_v55 = vld [vmem:[%s4783_s8 + $0x8] sm:$0xff]  ;;  %v1849_v58 = vld [vmem:[%s4782_s7 + $0x10] sm:$0xff] }
 0x3ed   : >> { %s1754_s16 = scalar_lea.vmem [#allocation2], %s2895_s27  ;;  %3166 = vset.pattern.permute.xlu1 %v3416_v50  ;;  %3165 = vset.pattern.permute.xlu0 %v3416_v50  ;;  %v2005_v56 = vld [vmem:[%s4784_s9] sm:$0xff]  ;;  %v2006_v57 = vld [vmem:[%s4784_s9 + $0x8] sm:$0xff]  ;;  %v1850_v59 = vld [vmem:[%s4782_s7 + $0x18] sm:$0xff] }
 0x3ee   : >> { %v1975_v63 = vld [vmem:[%s4783_s8 + $0x10] sm:$0xff]  ;;  %v1976_v33 = vld [vmem:[%s4783_s8 + $0x18] sm:$0xff]  ;;  %v3225_v44 = vld [vmem:[#allocation8 + $0x14] ss:$8 sps:$4 sm:$0xff]  }
 0x3ef   : >> { %v2007_v22 = vld [vmem:[%s4784_s9 + $0x10] sm:$0xff]  ;;  %v2008_v24 = vld [vmem:[%s4784_s9 + $0x18] sm:$0xff]  ;;  %v3227_v5 = vld [vmem:[#allocation8 + $0x10] ss:$8 sps:$4 sm:$0xff]  }
 0x3f0   : >> { %v3224_v42 = vld [vmem:[#allocation8] ss:$8 sps:$4 sm:$0xff]  }
 0x3f1   : >> { %v4357_v17 = vld [vmem:[%s1754_s16 + $0x20] ss:$8 sps:$4 sm:$0xff]   ;;  %v4359_v0 = vld [vmem:[%s1754_s16 + $0x10] ss:$8 sps:$4 sm:$0xff]   ;;  %v4363_v3 = vld [vmem:[%s1754_s16 + $0x24] ss:$8 sps:$4 sm:$0xff]  }
 0x3f2   : >> { %1829 = vrot.lane.b32.xlu0 %v4357_v17, %s3414_s30  ;;  %1812 = vrot.lane.b32.xlu1 %v4359_v0, %s3415_s1  ;;  %v4366_v18 = vld [vmem:[%s1754_s16 + $0x14] ss:$8 sps:$4 sm:$0xff]   ;;  %v4373_v19 = vld [vmem:[%s1754_s16] ss:$8 sps:$4 sm:$0xff]  }
 0x3f3   : >> { %v4377_v1 = vld [vmem:[%s1754_s16 + $0x4] ss:$8 sps:$4 sm:$0xff]   ;;  %v4386_v2 = vld [vmem:[%s1754_s16 + $0x30] ss:$8 sps:$4 sm:$0xff]   ;;  %v4389_v31 = vld [vmem:[%s1754_s16 + $0x34] ss:$8 sps:$4 sm:$0xff]  }
 0x3f4   : >> { %v4393_v32 = vld [vmem:[%s1754_s16 + $0x40] ss:$8 sps:$4 sm:$0xff]   ;;  %v4397_v34 = vld [vmem:[%s1754_s16 + $0x44] ss:$8 sps:$4 sm:$0xff]  }
 0x3f6   : >> { %1831 = vrot.lane.b32.xlu0 %v4363_v3, %s3414_s30  ;;  %1814 = vrot.lane.b32.xlu1 %v4366_v18, %s3415_s1 }
 0x3fa   : >> { %1805 = vrot.lane.b32.xlu0 %v4359_v0, %s3414_s30  ;;  %1807 = vrot.lane.b32.xlu1 %v4366_v18, %s3414_s30 }
 0x3fe   : >> { %1787 = vrot.lane.b32.xlu0 %v4373_v19, %s3415_s1  ;;  %1789 = vrot.lane.b32.xlu1 %v4377_v1, %s3415_s1 }
 0x402   : >> { %1779 = vrot.lane.b32.xlu0 %v4373_v19, %s3414_s30  ;;  %1781 = vrot.lane.b32.xlu1 %v4377_v1, %s3414_s30 }
 0x406   : >> { %1836 = vrot.lane.b32.xlu0 %v4357_v17, %s3415_s1  ;;  %1838 = vrot.lane.b32.xlu1 %v4363_v3, %s3415_s1 }
 0x40a   : >> { %2053 = vrot.lane.b32.xlu0 %v4386_v2, %s3414_s30  ;;  %2055 = vrot.lane.b32.xlu1 %v4389_v31, %s3414_s30 }
 0x40e   : >> { %2184 = vrot.lane.b32.xlu0 %v4393_v32, %s3414_s30  ;;  %2186 = vrot.lane.b32.xlu1 %v4397_v34, %s3414_s30 }
 0x412   : >> { %2060 = vrot.lane.b32.xlu0 %v4386_v2, %s3415_s1  ;;  %2062 = vrot.lane.b32.xlu1 %v4389_v31, %s3415_s1 }
 0x416   : >> { %2191 = vrot.lane.b32.xlu0 %v4393_v32, %s3415_s1  ;;  %2193 = vrot.lane.b32.xlu1 %v4397_v34, %s3415_s1 }
 0x41a   : >> { %1858 = vperm.xlu1 %3166, %v1848_v48   ;;  %1853 = vperm.xlu0 %3165, %v1847_v49  }
 0x41e   : >> { %1979 = vperm.xlu1 %3166, %v1973_v51   ;;  %1984 = vperm.xlu0 %3165, %v1974_v55  }
 0x422   : >> { %2011 = vperm.xlu1 %3166, %v2005_v56   ;;  %2016 = vperm.xlu0 %3165, %v2006_v57  }
 0x426   : >> { %1863 = vperm.xlu1 %3166, %v1849_v58   ;;  %1868 = vperm.xlu0 %3165, %v1850_v59  }
 0x42a   : >> { %1989 = vperm.xlu1 %3166, %v1975_v63   ;;  %1994 = vperm.xlu0 %3165, %v1976_v33  }
 0x42e   : >> { %2021 = vperm.xlu1 %3166, %v2007_v22   ;;  %2026 = vperm.xlu0 %3165, %v2008_v24  }
 0x464   : >> { %v1830_v10 = vpop.permute.xlu0 %1829  ;;  %v1813_v26 = vpop.permute.xlu1 %1812 }
 0x468   : >> { %v4451_v27 = vpop.permute.xlu0 %1831  ;;  %v1815_v53 = vpop.permute.xlu1 %1814 }
 0x469   : >> { %1896 = vmatprep.subr.bf16.mxu0 %v4451_v27  ;;  %v4456_v28 = vsel %vm493_vm1, %v1830_v10, %v4451_v27  ;;  %v1816_v9 = vsel %vm509_vm2, %v1813_v26, %v1815_v53 }
 0x46a   : >> { %1897 = vmatpush1.bf16.msra.mxu0 %v4456_v28 }
 0x46b   : >> { %1898 = vmatprep.subr.bf16.mxu0 %v4363_v3 }
 0x46c   : >> { %v1806_v29 = vpop.permute.xlu0 %1805  ;;  %v1808_v23 = vpop.permute.xlu1 %1807 }
 0x46d   : >> { %v1809_v30 = vsel %vm493_vm1, %v1806_v29, %v1808_v23 }
 0x46e   : >> { %1899 = vmatpush1.bf16.msra.mxu0 %v4357_v17 }
 0x46f   : >> { %1900 = vmatprep.subr.bf16.mxu0 %v1815_v53 }
 0x470   : >> { %v1788_v25 = vpop.permute.xlu0 %1787  ;;  %v1790_v62 = vpop.permute.xlu1 %1789 }
 0x471   : >> { %v1792_v47 = vsel %vm509_vm2, %v1788_v25, %v1790_v62 }
 0x472   : >> { %1901 = vmatpush1.bf16.msra.mxu0 %v1816_v9 }
 0x473   : >> { %1902 = vmatprep.subr.bf16.mxu0 %v1808_v23 }
 0x474   : >> { %v1780_v38 = vpop.permute.xlu0 %1779  ;;  %v1782_v43 = vpop.permute.xlu1 %1781 }
 0x475   : >> { %v1784_v39 = vsel %vm493_vm1, %v1780_v38, %v1782_v43 }
 0x476   : >> { %1903 = vmatpush1.bf16.msra.mxu0 %v1809_v30 }
 0x477   : >> { %1904 = vmatprep.subr.bf16.mxu0 %v4366_v18 }
 0x478   : >> { %v1837_v60 = vpop.permute.xlu0 %1836  ;;  %v1839_v61 = vpop.permute.xlu1 %1838 }
 0x479   : >> { %v1840_v6 = vsel %vm509_vm2, %v1837_v60, %v1839_v61 }
 0x47a   : >> { %1905 = vmatpush1.bf16.msra.mxu0 %v4359_v0 }
 0x47b   : >> { %1906 = vmatprep.subr.bf16.mxu0 %v1790_v62 }
 0x47c   : >> { %v2054_v8 = vpop.permute.xlu0 %2053  ;;  %v2056_v52 = vpop.permute.xlu1 %2055 }
 0x47d   : >> { %2067 = vmatprep.subr.bf16.mxu1 %v2056_v52  ;;  %v2057_v36 = vsel %vm493_vm1, %v2054_v8, %v2056_v52 }
 0x47e   : >> { %1907 = vmatpush1.bf16.msra.mxu0 %v1792_v47  ;;  %2068 = vmatpush1.bf16.msra.mxu1 %v2057_v36 }
 0x47f   : >> { %1908 = vmatprep.subr.bf16.mxu0 %v1782_v43  ;;  %2069 = vmatprep.subr.bf16.mxu1 %v4389_v31 }
 0x480   : >> { %v2187_v40 = vpop.permute.xlu1 %2186  ;;  %v2185_v41 = vpop.permute.xlu0 %2184 }
 0x481   : >> { %v2188_v4 = vsel %vm493_vm1, %v2185_v41, %v2187_v40 }
 0x482   : >> { %1909 = vmatpush1.bf16.msra.mxu0 %v1784_v39  ;;  %2070 = vmatpush1.bf16.msra.mxu1 %v4386_v2 }
 0x483   : >> { %1910 = vmatprep.subr.bf16.mxu0 %v4377_v1  ;;  %2071 = vmatprep.subr.bf16.mxu1 %v1839_v61 }
 0x484   : >> { %v2063_v21 = vpop.permute.xlu1 %2062  ;;  %v2061_v45 = vpop.permute.xlu0 %2060 }
 0x485   : >> { %v2064_v54 = vsel %vm509_vm2, %v2061_v45, %v2063_v21 }
 0x486   : >> { %1911 = vmatpush1.bf16.msra.mxu0 %v4373_v19  ;;  %2072 = vmatpush1.bf16.msra.mxu1 %v1840_v6 }
 0x487   : >> { %1926 = vmatprep.subr.bf16.mxu0 %v1839_v61  ;;  %2073 = vmatprep.subr.bf16.mxu1 %v4451_v27 }
 0x488   : >> { %v2194_v7 = vpop.permute.xlu1 %2193  ;;  %v2192_v37 = vpop.permute.xlu0 %2191 }
 0x489   : >> { %v2195_v35 = vsel %vm509_vm2, %v2192_v37, %v2194_v7 }
 0x48a   : >> { %1927 = vmatpush2.bf16.msra.mxu0 %v1840_v6  ;;  %2074 = vmatpush1.bf16.msra.mxu1 %v4456_v28 }
 0x48b   : >> { %2198 = vmatprep.subr.bf16.mxu0 %v2187_v40  ;;  %2075 = vmatprep.subr.bf16.mxu1 %v4363_v3 }
 0x48d   : >> { %1929 = vmatmul.mubr.bf16.vlgmr.msra.gmra.mxu0 %v3224_v42 }
 0x48e   : >> { %2199 = vmatpush1.bf16.msra.mxu0 %v2188_v4  ;;  %2855 = vmatprep.mubr.msk.bf16.mxu0 %vm640_vm0, %v3225_v44 }
 0x48f   : >> { %2076 = vmatpush1.bf16.msra.mxu1 %v4357_v17  ;;  %2200 = vmatprep.subr.bf16.mxu0 %v4397_v34 }
 0x490   : >> { %2077 = vmatprep.subr.bf16.mxu1 %v1815_v53 }
 0x492   : >> { %2201 = vmatpush1.bf16.msra.mxu0 %v4393_v32 }
 0x493   : >> { %2078 = vmatpush1.bf16.msra.mxu1 %v1816_v9  ;;  %2202 = vmatprep.subr.bf16.mxu0 %v2063_v21 }
 0x494   : >> { %2079 = vmatprep.subr.bf16.mxu1 %v1808_v23 }
 0x495   : >> { %1939 = vmatmul.mubr.bf16.gmra.mxu0 %v3227_v5  ;;  %v4496_v11 = vpop.permute.xlu1 %1858  ;;  %v4500_v16 = vpop.permute.xlu0 %1853 }
 0x496   : >> { %2203 = vmatpush1.bf16.msra.mxu0 %v2064_v54  ;;  %2868 = vmatprep.mubr.msk.bf16.mxu0 %vm640_vm0, %v4399_v46 }
 0x497   : >> { %2080 = vmatpush1.bf16.msra.mxu1 %v1809_v30  ;;  %2204 = vmatprep.subr.bf16.mxu0 %v2056_v52 }
 0x498   : >> { %2081 = vmatprep.subr.bf16.mxu1 %v4366_v18 }
 0x499   : >> { %v4498_v14 = vpop.permute.xlu1 %1979  ;;  %v4506_v18 = vpop.permute.xlu0 %1984 }
 0x49a   : >> { %2205 = vmatpush1.bf16.msra.mxu0 %v2057_v36 }
 0x49b   : >> { %2082 = vmatpush1.bf16.msra.mxu1 %v4359_v0  ;;  %2206 = vmatprep.subr.bf16.mxu0 %v4389_v31 }
 0x49c   : >> { %2097 = vmatprep.subr.bf16.mxu1 %v2063_v21 }
 0x49d   : >> { %v4503_v0 = vpop.permute.xlu1 %2011  ;;  %v4512_v49 = vpop.permute.xlu0 %2016 }
 0x49e   : >> { %2207 = vmatpush1.bf16.msra.mxu0 %v4386_v2 }
 0x49f   : >> { %2098 = vmatpush2.bf16.msra.mxu1 %v2064_v54  ;;  %2208 = vmatprep.subr.bf16.mxu0 %v1839_v61 }
 0x4a0   : >> { %2482 = vmatprep.subr.bf16.mxu1 %v3416_v50 }
 0x4a1   : >> { %v4509_v31 = vpop.permute.xlu1 %1863  ;;  %v4518_v10 = vpop.permute.xlu0 %1868 }
 0x4a2   : >> { %2100 = vmatmul.mubr.bf16.vlgmr.msra.gmra.mxu1 %v3224_v42  ;;  %2209 = vmatpush1.bf16.msra.mxu0 %v1840_v6 }
 0x4a3   : >> { %2210 = vmatprep.subr.bf16.mxu0 %v4451_v27  ;;  %2862 = vmatprep.mubr.msk.bf16.mxu1 %vm640_vm0, %v3225_v44 }
 0x4a5   : >> { %v4530_v6 = vpop.permute.xlu1 %1989 }
 0x4a6   : >> { %2211 = vmatpush1.bf16.msra.mxu0 %v4456_v28 }
 0x4a7   : >> { %2212 = vmatprep.subr.bf16.mxu0 %v4363_v3 }
 0x4aa   : >> { %2110 = vmatmul.mubr.bf16.gmra.mxu1 %v3227_v5  ;;  %2213 = vmatpush1.bf16.msra.mxu0 %v4357_v17 }
 0x4ab   : >> { %2228 = vmatprep.subr.bf16.mxu0 %v2194_v7 }
 0x4ae   : >> { %2229 = vmatpush2.bf16.msra.mxu0 %v2195_v35 }
 0x4b1   : >> { %2231 = vmatmul.mubr.bf16.vlgmr.msra.gmra.mxu0 %v3224_v42 }
 0x4b2   : >> { %2869 = vmatprep.mubr.msk.bf16.mxu0 %vm640_vm0, %v3225_v44 }
 0x4b9   : >> { %2241 = vmatmul.mubr.bf16.gmra.mxu0 %v3227_v5 }
 0x54d   : >> { %v1930_v12 = vpop.f32.mrf.mxu0 }
 0x54e   : >> { %v1931_v20 = vadd.f32 %v1930_v12, %v4500_v16 }
 0x54f   : >> { %v1932_v13 = vpop.f32.mrf.mxu0 }
 0x550   : >> { %v1933_v3 = vadd.f32 %v1932_v13, %v4500_v16  ;;  %v1957_v1 = vmul.f32 0.1, %v1931_v20  ;;  %vm1949_vm5 = vcmp.gt.f32.partialorder %v1931_v20, 0.0 }
 0x551   : >> { %v1934_v15 = vpop.f32.mrf.mxu0 }
 0x552   : >> { %v1935_v2 = vadd.f32 %v1934_v15, %v4496_v11  ;;  %v1958_v32 = vmul.f32 0.1, %v1933_v3  ;;  %vm1950_vm6 = vcmp.gt.f32.partialorder %v1933_v3, 0.0  ;;  %v1965_v48 = vsel %vm1949_vm5, %v1931_v20, %v1957_v1 }
 0x553   : >> { %v1936_v17 = vpop.f32.mrf.mxu0  ;;  %v1997_v59 = vmul.f32 %v4498_v14, %v1965_v48 }
 0x554   : >> { %v1937_v34 = vadd.f32 %v1936_v17, %v4496_v11  ;;  %v1959_v55 = vmul.f32 0.1, %v1935_v2  ;;  %v1966_v56 = vsel %vm1950_vm6, %v1933_v3, %v1958_v32  ;;  %vm1951_vm7 = vcmp.gt.f32.partialorder %v1935_v2, 0.0 }
 0x555   : >> { %v1940_v19 = vpop.f32.mrf.mxu0  ;;  %v1998_v26 = vmul.f32 %v4498_v14, %v1966_v56  ;;  %v4523_v62 = vadd.f32 %v4503_v0, %v1997_v59  ;;  %v4558_v59 = vpop.permute.xlu0 %1994 }
 0x556   : >> { %v1941_v51 = vadd.f32 %v1940_v19, %v4509_v31  ;;  %v1960_v57 = vmul.f32 0.1, %v1937_v34  ;;  %vm1952_vm8 = vcmp.gt.f32.partialorder %v1937_v34, 0.0  ;;  %v1967_v27 = vsel %vm1951_vm7, %v1935_v2, %v1959_v55 }
 0x557   : >> { %v1942_v46 = vpop.f32.mrf.mxu0  ;;  %v1999_v47 = vmul.f32 %v4506_v18, %v1967_v27  ;;  %v4541_v3 = vadd.f32 %v4503_v0, %v1998_v26 }
 0x558   : >> { %v1943_v33 = vadd.f32 %v1942_v46, %v4509_v31  ;;  %v1961_v24 = vmul.f32 0.1, %v1941_v51  ;;  %vm1953_vm9 = vcmp.gt.f32.partialorder %v1941_v51, 0.0  ;;  %v1968_v28 = vsel %vm1952_vm8, %v1937_v34, %v1960_v57  ;;  %v4547_v34 = vpop.permute.xlu1 %2021 }
 0x559   : >> { %v1944_v58 = vpop.f32.mrf.mxu0  ;;  %v2000_v8 = vmul.f32 %v4506_v18, %v1968_v28  ;;  %v4544_v19 = vadd.f32 %v4512_v49, %v1999_v47 }
 0x55a   : >> { %v1962_v30 = vmul.f32 0.1, %v1943_v33  ;;  %v1945_v38 = vadd.f32 %v1944_v58, %v4518_v10  ;;  %vm1954_vm11 = vcmp.gt.f32.partialorder %v1943_v33, 0.0  ;;  %v1969_v61 = vsel %vm1953_vm9, %v1941_v51, %v1961_v24 }
 0x55b   : >> { %v1946_v25 = vpop.f32.mrf.mxu0  ;;  %v2001_v45 = vmul.f32 %v4530_v6, %v1969_v61  ;;  %v4550_v46 = vadd.f32 %v4512_v49, %v2000_v8 }
 0x55c   : >> { %v1947_v36 = vadd.f32 %v1946_v25, %v4518_v10  ;;  %v1963_v44 = vmul.f32 0.1, %v1945_v38  ;;  %v1970_v21 = vsel %vm1954_vm11, %v1943_v33, %v1962_v30  ;;  %vm1955_vm14 = vcmp.gt.f32.partialorder %v1945_v38, 0.0 }
 0x55d   : >> { %v2002_v2 = vmul.f32 %v4530_v6, %v1970_v21  ;;  %v4568_v24 = vadd.f32 %v4547_v34, %v2001_v45 }
 0x55e   : >> { %vm1956_vm3 = vcmp.gt.f32.partialorder %v1947_v36, 0.0  ;;  %v1964_v12 = vmul.f32 0.1, %v1947_v36  ;;  %v1971_v48 = vsel %vm1955_vm14, %v1945_v38, %v1963_v44 }
 0x560   : >> { %v1972_v57 = vsel %vm1956_vm3, %v1947_v36, %v1964_v12  ;;  %vm2478_vm3 = vcmask 1044480  }
 0x562   : >> { %v2101_v63 = vpop.f32.mrf.mxu1 }
 0x563   : >> { %v2102_v22 = vadd.f32 %v2101_v63, %v4500_v16 }
 0x564   : >> { %v2103_v53 = vpop.f32.mrf.mxu1 }
 0x565   : >> { %vm2120_vm10 = vcmp.gt.f32.partialorder %v2102_v22, 0.0  ;;  %v2128_v29 = vmul.f32 0.1, %v2102_v22  ;;  %v2104_v23 = vadd.f32 %v2103_v53, %v4500_v16  ;;  %v4571_v53 = vmul.f32 %v4558_v59, %v1971_v48 }
 0x566   : >> { %v2105_v9 = vpop.f32.mrf.mxu1 }
 0x567   : >> { %vm2121_vm12 = vcmp.gt.f32.partialorder %v2104_v23, 0.0  ;;  %v2129_v43 = vmul.f32 0.1, %v2104_v23  ;;  %v2106_v60 = vadd.f32 %v2105_v9, %v4496_v11  ;;  %v2136_v52 = vsel %vm2120_vm10, %v2102_v22, %v2128_v29 }
 0x568   : >> { %v2107_v39 = vpop.f32.mrf.mxu1  ;;  %v2144_v37 = vmul.f32 %v2136_v52, %v4498_v14  ;;  %v4574_v29 = vadd.f32 %v4547_v34, %v2002_v2  ;;  %v4579_v9 = vmul.f32 %v4558_v59, %v1972_v57 }
 0x569   : >> { %v2137_v40 = vsel %vm2121_vm12, %v2104_v23, %v2129_v43  ;;  %vm2122_vm13 = vcmp.gt.f32.partialorder %v2106_v60, 0.0  ;;  %v2130_v41 = vmul.f32 0.1, %v2106_v60  ;;  %v2108_v42 = vadd.f32 %v2107_v39, %v4496_v11 }
 0x56a   : >> { %v2111_v4 = vpop.f32.mrf.mxu1  ;;  %v2145_v35 = vmul.f32 %v2137_v40, %v4498_v14  ;;  %v4555_v56 = vadd.f32 %v2144_v37, %v4503_v0 }
 0x56b   : >> { %v2138_v5 = vsel %vm2122_vm13, %v2106_v60, %v2130_v41  ;;  %vm2123_vm15 = vcmp.gt.f32.partialorder %v2108_v42, 0.0  ;;  %v2131_v54 = vmul.f32 0.1, %v2108_v42  ;;  %v2112_v7 = vadd.f32 %v2111_v4, %v4509_v31 }
 0x56c   : >> { %v2113_v13 = vpop.f32.mrf.mxu1  ;;  %v2146_v15 = vmul.f32 %v2138_v5, %v4506_v18  ;;  %v4561_v63 = vadd.f32 %v2145_v35, %v4503_v0  ;;  %v2160_v43 = vmax.f32 %v4523_v62, %v4555_v56 }
 0x56d   : >> { %vm2124_vm4 = vcmp.gt.f32.partialorder %v2112_v7, 0.0  ;;  %v2132_v20 = vmul.f32 0.1, %v2112_v7  ;;  %v2114_v17 = vadd.f32 %v2113_v13, %v4509_v31  ;;  %v2139_v1 = vsel %vm2123_vm15, %v2108_v42, %v2131_v54 }
 0x56e   : >> { %v2115_v32 = vpop.f32.mrf.mxu1  ;;  %v4564_v33 = vadd.f32 %v2146_v15, %v4512_v49  ;;  %v2147_v22 = vmul.f32 %v2139_v1, %v4506_v18  ;;  %v2161_v47 = vmax.f32 %v4541_v3, %v4561_v63 }
 0x56f   : >> { %v2133_v51 = vmul.f32 0.1, %v2114_v17  ;;  %v2116_v55 = vadd.f32 %v2115_v32, %v4518_v10  ;;  %v2140_v58 = vsel %vm2124_vm4, %v2112_v7, %v2132_v20  ;;  %vm2125_vm5 = vcmp.gt.f32.partialorder %v2114_v17, 0.0 }
 0x570   : >> { %v2117_v26 = vpop.f32.mrf.mxu1  ;;  %v2148_v25 = vmul.f32 %v2140_v58, %v4530_v6  ;;  %v2162_v8 = vmax.f32 %v4544_v19, %v4564_v33  ;;  %v2155_v52 = vadd.f32 %v2147_v22, %v4512_v49  ;;  %vm2471_vm4 = vcmask 211968  }
 0x571   : >> { %v2232_v27 = vpop.f32.mrf.mxu0  ;;  %v2134_v28 = vmul.f32 0.1, %v2116_v55  ;;  %v2141_v30 = vsel %vm2125_vm5, %v2114_v17, %v2133_v51  ;;  %vm2126_vm6 = vcmp.gt.f32.partialorder %v2116_v55, 0.0  ;;  %v2118_v60 = vadd.f32 %v2117_v26, %v4518_v10 }
 0x572   : >> { %v2233_v23 = vadd.f32 %v2232_v27, %v4500_v16  ;;  %v2149_v40 = vmul.f32 %v2141_v30, %v4530_v6  ;;  %v4593_v44 = vadd.f32 %v2148_v25, %v4547_v34  ;;  %v2163_v7 = vmax.f32 %v4550_v46, %v2155_v52 }
 0x573   : >> { %v2234_v38 = vpop.f32.mrf.mxu0  ;;  %v2142_v41 = vsel %vm2126_vm6, %v2116_v55, %v2134_v28  ;;  %v2135_v5 = vmul.f32 0.1, %v2118_v60  ;;  %vm2127_vm10 = vcmp.gt.f32.partialorder %v2118_v60, 0.0  ;;  %vm2550_vm5 = vcmask 420864  }
 0x574   : >> { %vm2251_vm7 = vcmp.gt.f32.partialorder %v2233_v23, 0.0  ;;  %v2259_v61 = vmul.f32 0.1, %v2233_v23  ;;  %v2235_v36 = vadd.f32 %v2234_v38, %v4500_v16  ;;  %v2150_v37 = vmul.f32 %v2142_v41, %v4558_v59 }
 0x575   : >> { %v2236_v39 = vpop.f32.mrf.mxu0  ;;  %v2157_v13 = vadd.f32 %v2149_v40, %v4547_v34  ;;  %v2143_v2 = vsel %vm2127_vm10, %v2118_v60, %v2135_v5  ;;  %v2164_v48 = vmax.f32 %v4568_v24, %v4593_v44 }
 0x576   : >> { %v2267_v42 = vsel %vm2251_vm7, %v2233_v23, %v2259_v61  ;;  %v2237_v62 = vadd.f32 %v2236_v39, %v4496_v11  ;;  %vm2252_vm8 = vcmp.gt.f32.partialorder %v2235_v36, 0.0  ;;  %v2260_v21 = vmul.f32 0.1, %v2235_v36  ;;  %v2027_v61 = vpop.permute.xlu0 %2026 }
 0x577   : >> { %v2275_v4 = vmul.f32 %v2267_v42, %v4498_v14  ;;  %v2238_v45 = vpop.f32.mrf.mxu0  ;;  %v2151_v33 = vmul.f32 %v2143_v2, %v4558_v59 }
 0x578   : >> { %vm2253_vm9 = vcmp.gt.f32.partialorder %v2237_v62, 0.0  ;;  %v2261_v54 = vmul.f32 0.1, %v2237_v62  ;;  %v2239_v16 = vadd.f32 %v2238_v45, %v4496_v11  ;;  %v2268_v35 = vsel %vm2252_vm8, %v2235_v36, %v2260_v21 }
 0x579   : >> { %v2242_v12 = vpop.f32.mrf.mxu0  ;;  %v2276_v15 = vmul.f32 %v2268_v35, %v4498_v14  ;;  %v2283_v17 = vadd.f32 %v2275_v4, %v4503_v0  ;;  %v2159_v36 = vadd.f32 %v2151_v33, %v2027_v61  ;;  %v3232_v35 = vld [vmem:[%s4785_s10 + $0x18] sm:$0xff]  }
 0x57a   : >> { %v2269_v20 = vsel %vm2253_vm9, %v2237_v62, %v2261_v54  ;;  %vm2254_vm11 = vcmp.gt.f32.partialorder %v2239_v16, 0.0  ;;  %v2262_v19 = vmul.f32 0.1, %v2239_v16  ;;  %v2243_v11 = vadd.f32 %v2242_v12, %v4509_v31  ;;  %v3228_v54 = vld [vmem:[%s4785_s10 + $0x38] sm:$0xff]   ;;  %v3233_v12 = vld [vmem:[%s4785_s10 + $0x10] sm:$0xff]  }
 0x57b   : >> { %v2277_v3 = vmul.f32 %v2269_v20, %v4506_v18  ;;  %v2244_v1 = vpop.f32.mrf.mxu0  ;;  %v2284_v32 = vadd.f32 %v2276_v15, %v4503_v0  ;;  %2483 = vmatpush1.bf16.msra.mxu1 %v3228_v54  ;;  %v3235_v15 = vld [vmem:[%s4785_s10] sm:$0xff]   ;;  %v3236_v20 = vld [vmem:[%s4785_s10 + $0x48] sm:$0x1f]  }
 0x57c   : >> { %v2245_v46 = vadd.f32 %v2244_v1, %v4509_v31  ;;  %v2270_v51 = vsel %vm2254_vm11, %v2239_v16, %v2262_v19  ;;  %vm2255_vm12 = vcmp.gt.f32.partialorder %v2243_v11, 0.0  ;;  %v2263_v55 = vmul.f32 0.1, %v2243_v11  ;;  %2484 = vmatprep.subr.bf16.mxu1 %v3416_v50  ;;  %v3237_v1 = vld [vmem:[%s4785_s10 + $0x40] sm:$0xff]  }
 0x57d   : >> { %v2285_v14 = vadd.f32 %v2277_v3, %v4512_v49  ;;  %v2246_v56 = vpop.f32.mrf.mxu0  ;;  %v2278_v57 = vmul.f32 %v2270_v51, %v4506_v18  ;;  %v4612_v31 = vmax.f32 %v2160_v43, %v2283_v17  ;;  %v4614_v26 = vmax.f32 %v2161_v47, %v2284_v32 }
 0x57e   : >> { %vm2256_vm13 = vcmp.gt.f32.partialorder %v2245_v46, 0.0  ;;  %v2264_v58 = vmul.f32 0.1, %v2245_v46  ;;  %v2247_v63 = vadd.f32 %v2246_v56, %v4518_v10  ;;  %v2271_v0 = vsel %vm2255_vm12, %v2243_v11, %v2263_v55 }
 0x57f   : >> { %v2248_v22 = vpop.f32.mrf.mxu0  ;;  %v2286_v24 = vadd.f32 %v2278_v57, %v4512_v49  ;;  %v2279_v27 = vmul.f32 %v2271_v0, %v4530_v6  ;;  %v3167_v30 = vpack.i.bf16 %v4614_v26, %v4612_v31  ;;  %v4623_v43 = vmax.f32 %v2162_v8, %v2285_v14 }
 0x580   : >> { %v2272_v28 = vsel %vm2256_vm13, %v2245_v46, %v2264_v58  ;;  %vm2257_vm14 = vcmp.gt.f32.partialorder %v2247_v63, 0.0  ;;  %v2265_v23 = vmul.f32 0.1, %v2247_v63  ;;  %v2249_v25 = vadd.f32 %v2248_v22, %v4518_v10 }
 0x581   : >> { %v2280_v18 = vmul.f32 %v2272_v28, %v4530_v6  ;;  %v2287_v38 = vadd.f32 %v2279_v27, %v4547_v34  ;;  %v4625_v60 = vmax.f32 %v2163_v7, %v2286_v24  ;;  %v2165_v49 = vmax.f32 %v4574_v29, %v2157_v13  ;;  %3168 = vrot.lane.b32.xlu1 %v3167_v30, %s3414_s30  ;;  %v3230_v7 = vld [vmem:[%s4785_s10 + $0x28] sm:$0xff]  }
 0x582   : >> { %v2273_v52 = vsel %vm2257_vm14, %v2247_v63, %v2265_v23  ;;  %vm2258_vm15 = vcmp.gt.f32.partialorder %v2249_v25, 0.0  ;;  %v2266_v6 = vmul.f32 0.1, %v2249_v25  ;;  %v2158_v10 = vadd.f32 %v2150_v37, %v2027_v61  ;;  %v3231_v37 = vld [vmem:[%s4785_s10 + $0x20] sm:$0xff]   ;;  %v3234_v13 = vld [vmem:[%s4785_s10 + $0x8] sm:$0xff]  }
 0x583   : >> { %v2288_v47 = vadd.f32 %v2280_v18, %v4547_v34  ;;  %v2281_v39 = vmul.f32 %v2273_v52, %v4558_v59  ;;  %v3172_v8 = vpack.i.bf16 %v4625_v60, %v4623_v43  ;;  %v4633_v41 = vmax.f32 %v2164_v48, %v2287_v38 }
 0x584   : >> { %v2274_v40 = vsel %vm2258_vm15, %v2249_v25, %v2266_v6  ;;  %v2035_v29 = vadd.f32 %v2027_v61, %v4571_v53  ;;  %v2036_v34 = vadd.f32 %v2027_v61, %v4579_v9  ;;  %v2480_v17 = vsel %vm2478_vm3, %v3236_v20, 0 }
 0x585   : >> { %v4635_v42 = vmax.f32 %v2165_v49, %v2288_v47  ;;  %v2289_v62 = vadd.f32 %v2281_v39, %v2027_v61  ;;  %v2282_v44 = vmul.f32 %v2274_v40, %v4558_v59  ;;  %3173 = vrot.lane.b32.xlu0 %v3172_v8, %s3414_s30  ;;  %v3229_v59 = vld [vmem:[%s4785_s10 + $0x30] sm:$0xff]  }
 0x586   : >> { %v2167_v21 = vmax.f32 %v2036_v34, %v2159_v36  ;;  %v2166_v5 = vmax.f32 %v2035_v29, %v2158_v10  ;;  %2485 = vmatpush1.bf16.msra.mxu1 %v3229_v59 }
 0x587   : >> { %v3177_v4 = vpack.i.bf16 %v4635_v42, %v4633_v41  ;;  %v2290_v45 = vadd.f32 %v2282_v44, %v2027_v61  ;;  %2486 = vmatprep.subr.bf16.mxu1 %v3416_v50 }
 0x588   : >> { %v4647_v53 = vmax.f32 %v2166_v5, %v2289_v62 }
 0x589   : >> { %3178 = vrot.lane.b32.xlu1 %v3177_v4, %s3414_s30  ;;  %v4649_v9 = vmax.f32 %v2167_v21, %v2290_v45 }
 0x58a   : >> { %2487 = vmatpush1.bf16.msra.mxu1 %v3230_v7 }
 0x58b   : >> { %v3182_v16 = vpack.i.bf16 %v4649_v9, %v4647_v53  ;;  %2488 = vmatprep.subr.bf16.mxu1 %v3416_v50 }
 0x58d   : >> { %3183 = vrot.lane.b32.xlu0 %v3182_v16, %s3414_s30 }
 0x58e   : >> { %2489 = vmatpush1.bf16.msra.mxu1 %v3231_v37 }
 0x58f   : >> { %2490 = vmatprep.subr.bf16.mxu1 %v3416_v50 }
 0x592   : >> { %2491 = vmatpush1.bf16.msra.mxu1 %v3232_v35 }
 0x593   : >> { %2492 = vmatprep.subr.bf16.mxu1 %v3416_v50 }
 0x596   : >> { %2493 = vmatpush1.bf16.msra.mxu1 %v3233_v12 }
 0x597   : >> { %2494 = vmatprep.subr.bf16.mxu1 %v3416_v50 }
 0x59a   : >> { %2495 = vmatpush1.bf16.msra.mxu1 %v3234_v13 }
 0x59b   : >> { %2496 = vmatprep.subr.bf16.mxu1 %v3416_v50 }
 0x59e   : >> { %2497 = vmatpush1.bf16.msra.mxu1 %v3235_v15 }
 0x59f   : >> { %2510 = vmatprep.subr.bf16.mxu1 %v3416_v50 }
 0x5a2   : >> { %2511 = vmatpush2.bf16.msra.mxu1 %v2480_v17 }
 0x5a3   : >> { %2512 = vmatprep.subr.bf16.mxu1 %v3416_v50 }
 0x5a6   : >> { %2513 = vmatpush2.bf16.msra.mxu1 %v3237_v1 }
 0x5f3   : >> { %v3169_v3 = vpop.permute.xlu1 %3168 }
 0x5f4   : >> { %v3171_v19 = vunpack.i.h.bf16 %v3169_v3  ;;  %v3170_v11 = vunpack.i.l.bf16 %v3169_v3 }
 0x5f6   : >> { %v2337_v2 = vmax.f32 %v4614_v26, %v3171_v19  ;;  %v2324_v32 = vsel %vm493_vm1, %v3170_v11, %v3171_v19 }
 0x5f7   : >> { %v3174_v46 = vpop.permute.xlu0 %3173  ;;  %v2336_v48 = vmax.f32 %v4612_v31, %v2324_v32 }
 0x5f8   : >> { %v3176_v14 = vunpack.i.h.bf16 %v3174_v46  ;;  %v3175_v51 = vunpack.i.l.bf16 %v3174_v46 }
 0x5f9   : >> { %v3187_v57 = vpack.i.bf16 %v2337_v2, %v2336_v48 }
 0x5fa   : >> { %v2339_v55 = vmax.f32 %v4625_v60, %v3176_v14  ;;  %v2325_v50 = vsel %vm493_vm1, %v3175_v51, %v3176_v14 }
 0x5fb   : >> { %v3179_v56 = vpop.permute.xlu1 %3178  ;;  %v2338_v58 = vmax.f32 %v4623_v43, %v2325_v50  ;;  %3188 = vrot.lane.b32.xlu1 %v3187_v57, %s3414_s30 }
 0x5fc   : >> { %v3181_v63 = vunpack.i.h.bf16 %v3179_v56  ;;  %v3180_v33 = vunpack.i.l.bf16 %v3179_v56 }
 0x5fd   : >> { %v3192_v24 = vpack.i.bf16 %v2339_v55, %v2338_v58 }
 0x5fe   : >> { %v2341_v0 = vmax.f32 %v4635_v42, %v3181_v63  ;;  %v2326_v22 = vsel %vm493_vm1, %v3180_v33, %v3181_v63 }
 0x5ff   : >> { %v2340_v27 = vmax.f32 %v4633_v41, %v2326_v22  ;;  %v3184_v28 = vpop.permute.xlu0 %3183  ;;  %3193 = vrot.lane.b32.xlu0 %v3192_v24, %s3414_s30 }
 0x600   : >> { %v3186_v18 = vunpack.i.h.bf16 %v3184_v28  ;;  %v3185_v23 = vunpack.i.l.bf16 %v3184_v28 }
 0x601   : >> { %v3197_v25 = vpack.i.bf16 %v2341_v0, %v2340_v27 }
 0x602   : >> { %v2343_v30 = vmax.f32 %v4649_v9, %v3186_v18  ;;  %v2327_v38 = vsel %vm493_vm1, %v3185_v23, %v3186_v18 }
 0x603   : >> { %3198 = vrot.lane.b32.xlu1 %v3197_v25, %s3414_s30  ;;  %v2342_v49 = vmax.f32 %v4647_v53, %v2327_v38 }
 0x605   : >> { %v3202_v61 = vpack.i.bf16 %v2343_v30, %v2342_v49 }
 0x607   : >> { %3203 = vrot.lane.b32.xlu0 %v3202_v61, %s3414_s30  ;;  %s2900_s30 = sshll.u32 %s3402_s19, 4  ;;  %s1750_s19 = sadd.s32 1, %s3402_s19  }
 0x608   : >> { %s2549_s13 = scalar_lea.vmem %s3622_s25, %s2900_s30 [#allocation9]  ;;  %p1747_p10 = scmp.ge.s32.totalorder %s1750_s19, 52  }
 0x609   : > { %s2905_s29 = smul.u32 (%p1747_p10), 13312, %s3501_s21  ;;  %s2569_s6 = sshll.u32 (%p1747_p10), %s3622_s25, 4  ;;  %s4732_s6 = int_to_ptr.vmem [resolvable:$true] %s2569_s6 }
 0x60a   : > { %s2556_s12 = scalar_lea.sflag (%p1747_p10), [#allocation5], %s3607_s14  ;;  %s3318_s26 = scalar_lea.vmem (%p1747_p10), %s4732_s6, 13312 }
 0x60b   : > { %s4730_s22 = scalar_lea.hbm (%p1747_p10), %s4786_s11, %s2905_s29  ;;  %p3319_p1 = scmp.ne.s32.totalorder (%p1747_p10), %s4732_s6, %s3318_s26 }
 0x60c   : > { %p4812_p2 = scmp.ne.s32.totalorder (%p1747_p10), %s4805_s15, 0  ;;  %s3417_s19 = smov (%p1747_p10), [#allocation9]  }
 0x60d   : > { %s3322_s27 = sshll.u32 (%p1747_p10), %s3417_s19, 4  ;;  %s3323_s27 = int_to_ptr.vmem [resolvable:$false] %s3322_s27 }
 0x60e   : > { %p3320_p6 = pnand (%p1747_p10), %p3319_p1, %p4812_p2  ;;  %s3324_s21 = scalar_lea.vmem (%p1747_p10), %s3323_s27, 26624 }
 0x60f   : > { %p3325_p7 = scmp.lt.s32.totalorder (%p1747_p10), %s4732_s6, %s3323_s27  ;;  %p3326_p9 = scmp.lt.s32.totalorder (%p1747_p10), %s3324_s21, %s3318_s26 }
 0x610   : > { %p3321_p12 = pneg (%p1747_p10), %p3320_p6 }
 0x611   : > { %p3327_p13 = por (%p1747_p10), %p3326_p9, %p3325_p7 }
 0x613   : > { %p3328_p5 = pnand (%p1747_p10), %p3327_p13, %p3321_p12 }
 0x66d   : >> { %v3189_v47 = vpop.permute.xlu1 %3188 }
 0x66e   : >> { %v3191_v52 = vunpack.i.h.bf16 %v3189_v47  ;;  %v3190_v6 = vunpack.i.l.bf16 %v3189_v47 }
 0x670   : >> { %v2368_v36 = vsel %vm493_vm1, %v3190_v6, %v3191_v52  ;;  %v2381_v40 = vmax.f32 %v4614_v26, %v3191_v52 }
 0x671   : >> { %v3194_v10 = vpop.permute.xlu0 %3193  ;;  %v2380_v44 = vmax.f32 %v4612_v31, %v2368_v36 }
 0x672   : >> { %v3196_v39 = vunpack.i.h.bf16 %v3194_v10  ;;  %v3195_v8 = vunpack.i.l.bf16 %v3194_v10 }
 0x674   : >> { %v2383_v29 = vmax.f32 %v4625_v60, %v3196_v39  ;;  %v2369_v34 = vsel %vm493_vm1, %v3195_v8, %v3196_v39 }
 0x675   : >> { %v3199_v62 = vpop.permute.xlu1 %3198  ;;  %v2382_v4 = vmax.f32 %v4623_v43, %v2369_v34 }
 0x676   : >> { %v2389_v21 = vpack.c.bf16 %v2383_v29, %v2381_v40  ;;  %v3201_v45 = vunpack.i.h.bf16 %v3199_v62  ;;  %v3200_v5 = vunpack.i.l.bf16 %v3199_v62 }
 0x677   : >> { %v2388_v54 = vpack.c.bf16 %v2382_v4, %v2380_v44 }
 0x678   : >> { %2880 = vmatprep.mubr.msk.bf16.mxu1 %vm2471_vm4, %v2389_v21  ;;  %v2370_v26 = vsel %vm493_vm1, %v3200_v5, %v3201_v45  ;;  %v2385_v7 = vmax.f32 %v4635_v42, %v3201_v45 }
 0x679   : >> { %v3204_v59 = vpop.permute.xlu0 %3203  ;;  %2515 = vmatmul.mubr.bf16.vlgmr.msra.gmra.mxu1 %v2388_v54  ;;  %v2384_v37 = vmax.f32 %v4633_v41, %v2370_v26 }
 0x67a   : >> { %v3206_v60 = vunpack.i.h.bf16 %v3204_v59  ;;  %v3205_v16 = vunpack.i.l.bf16 %v3204_v59 }
 0x67c   : >> { %v2387_v31 = vmax.f32 %v4649_v9, %v3206_v60  ;;  %v2371_v43 = vsel %vm493_vm1, %v3205_v16, %v3206_v60 }
 0x67d   : >> { %v2386_v35 = vmax.f32 %v4647_v53, %v2371_v43 }
 0x67e   : >> { %v2391_v12 = vpack.c.bf16 %v2387_v31, %v2385_v7 }
 0x67f   : >> { %v2390_v13 = vpack.c.bf16 %v2386_v35, %v2384_v37 }
 0x680   : >> { %2881 = vmatprep.mubr.msk.bf16.mxu1 %vm2471_vm4, %v2391_v12 }
 0x681   : >> { %2523 = vmatmul.mubr.bf16.gmra.mxu1 %v2390_v13 }
 0x739   : >> { %v2516_v15 = vpop.f32.mrf.mxu1 }
 0x73a   : >> { %v2896_v20 = vpack.c.bf16 %v2516_v15, %v2516_v15 }
 0x73b   : >> { %v2518_v17 = vpop.f32.mrf.mxu1 }
 0x73c   : >> { %2551 = vst.msk [vmem:[%s2549_s13] sm:$0xf] %vm2550_vm5, %v2896_v20 }
 0x73d   : >> { %v2519_v42 = vpop.f32.mrf.mxu1 }
 0x73e   : >> { %v2897_v9 = vpack.c.bf16 %v2519_v42, %v2519_v42 }
 0x73f   : >> { %v2521_v3 = vpop.f32.mrf.mxu1 }
 0x740   : >> { %2552 = vst.msk [vmem:[%s2549_s13 + $0x4] sm:$0xf] %vm2550_vm5, %v2897_v9 }
 0x741   : >> { %v2524_v19 = vpop.f32.mrf.mxu1 }
 0x742   : >> { %v2898_v41 = vpack.c.bf16 %v2524_v19, %v2524_v19 }
 0x743   : >> { %v2526_v11 = vpop.f32.mrf.mxu1 }
 0x744   : >> { %2553 = vst.msk [vmem:[%s2549_s13 + $0x8] sm:$0xf] %vm2550_vm5, %v2898_v41  ;;  %1749 = sbr.rel (!%p1747_p10) target bundleno = 1003 (0x3eb), region = 154 }
 0x745   : >> { %v2527_v53 = vpop.f32.mrf.mxu1 }
 0x746   : >> { %v2899_v1 = vpack.c.bf16 %v2527_v53, %v2527_v53 }
 0x747   : >> { %v2529_v2 = vpop.f32.mrf.mxu1 }
 0x748   : >> { %2554 = vst.msk [vmem:[%s2549_s13 + $0xc] sm:$0xf] %vm2550_vm5, %v2899_v1 }
 0x749   : > { %3331 = shalt.err (!%p3328_p5)
}
 0x74a   : > { %s3332_s25 = scalar_lea.hbm %s4730_s22, 13312  ;;  %s3336_s30 = scalar_lea.hbm %s4786_s11, 26624 }
 0x74b   : > { %p3333_p0 = scmp.ne.s32.totalorder %s4730_s22, %s3332_s25  ;;  %p3337_p3 = scmp.lt.s32.totalorder %s4730_s22, %s4786_s11 }
 0x74c   : > { %p3338_p11 = scmp.lt.s32.totalorder %s3336_s30, %s3332_s25 }
 0x74d   : > { %p3334_p4 = pnand %p3333_p0, %p4812_p2 }
 0x74e   : > { %p3339_p10 = por %p3338_p11, %p3337_p3 }
 0x74f   : > { %p3335_p8 = pneg %p3334_p4 }
 0x751   : > { %p3340_p1 = pnand %p3339_p10, %p3335_p8 }
 0x753   : > { %3343 = shalt.err (!%p3340_p1)
}
 0x754   : > { %s3418_s23 = smov 64   ;;  %s3419_s28 = smov 4  }
 0x755   : > { %2916 = dma.vmem_to_hbm [thread:$0]  (%p4812_p2), %s4732_s6, 13312, %s4730_s22, %s2556_s12, %s3418_s23, %s3418_s23, %s3419_s28  }
 0x756 PF: > { %s2584_s26 = sand.u32 1, %s3382_s17   ;;  %p4813_p6 = scmp.ne.s32.totalorder %s4798_s24, 0 }
 0x757   : > { %p4814_p12 = scmp.ge.s32.totalorder %s3394_s20, 2  ;;  %s2585_s19 = scalar_lea.sflag [#allocation5], %s2584_s26 }
 0x759   : > { %p2930_p7 = pnand %p4814_p12, %p4813_p6 }
 0x75b   : > { %p2931_p9 = pneg %p2930_p7 }
 0x75d   : > { %3377 = dma.done.wait (%p2931_p9), %s2585_s19, 13312  }
 0x75e   : > { %3379 = vsyncadd (%p2931_p9), %s2585_s19, 4294953984  ;;  %s4815_s20 = sld [smem:[#allocation14_spill]]  ;;  %s4818_s17 = smov %s3386_s18 }
 0x75f   : > { %s4816_s27 = sld [smem:[#allocation13_spill]] }
 0x760   : > { %s4817_s19 = sld [smem:[#allocation15_spill]] }
 0x764   : > { %p25_p13 = scmp.ge.s32.totalorder %s4815_s20, 4  }
 0x765   : > { %s4819_s18 = smov %s4816_s27 }
 0x766   :  { %27 = sbr.rel (!%p25_p13) target bundleno = 9 (0x9), region = 165 }
 0x76b   :  { %2590 = vsyncpa [#allocation4], 1 }
 0x76c   :  { %2592 = vsyncpa [#allocation4 + $0x1], 1 }
 0x76d   :  { %2593 = vsyncpa [#allocation7], 1 }
 0x76e   :  { %2594 = vsyncpa [#allocation5], 1 }
 0x76f   :  { %2596 = vsyncpa [#allocation5 + $0x1], 1 }

</bundles_post_ra>
